<compile_context>
chip_gen: v6e
topology: v6e:2x2x1
jax: 0.10.0
libtpu: 0.0.40
codegen_flags: <defaults>
</compile_context>

<pallas_src>
import jax
import jax.numpy as jnp
from jax.experimental import pallas as pl
from jax.experimental.pallas import tpu as pltpu

KSIZE = 4
EPS = 1e-5
NEG_SLOPE = 0.2

# ----------------------------------------------------------------------------
# Per-generation tiling / scoped-VMEM budget.
# ----------------------------------------------------------------------------
try:
    _VMEM_CAP = pltpu.get_tpu_info().vmem_capacity_bytes
except Exception:
    _VMEM_CAP = 64 << 20                      # conservative (v7x-sized) fallback
if _VMEM_CAP <= (64 << 20):                   # v7x: 64 MiB physical VMEM
    MAX_TM = 256
    _VMEM_LIMIT = 48 << 20
else:                                         # v5e / v6e: 128 MiB physical VMEM
    MAX_TM = 1024
    _VMEM_LIMIT = 96 << 20

_PAR = pltpu.CompilerParams(dimension_semantics=("parallel",),
                            vmem_limit_bytes=_VMEM_LIMIT)


def _round_up(x, m):
    return (x + m - 1) // m * m


def _row_tile(m):
    return min(MAX_TM, _round_up(m, 16))


def _leaky_f32(x):
    return jnp.where(x > 0, x, NEG_SLOPE * x)


# ----------------------------------------------------------------------------
# Kernels
# ----------------------------------------------------------------------------
def _conv_bias_act_kernel(p_ref, w_ref, b_ref, o_ref):
    """(TM,K)bf16 @ (K,C)bf16 -> f32, +bias, LeakyReLU, store bf16."""
    x = jnp.dot(p_ref[...], w_ref[...], preferred_element_type=jnp.float32)
    x = _leaky_f32(x + b_ref[...])                       # (1, C) broadcast
    o_ref[...] = x.astype(o_ref.dtype)


def _make_conv_stats_kernel(apply_leaky):
    """Conv matmul (no bias) + per-tile channel sum/sumsq for BatchNorm.

    If `apply_leaky`, the previous BN layer's deferred LeakyReLU is applied to
    the patch tile first (f32 VPU math; padded zero rows stay zero)."""
    def kernel(p_ref, w_ref, o_ref, st_ref):
        p = p_ref[...]
        if apply_leaky:
            p = _leaky_f32(p.astype(jnp.float32)).astype(p_ref.dtype)
        x = jnp.dot(p, w_ref[...], preferred_element_type=jnp.float32)
        o_ref[...] = x.astype(o_ref.dtype)               # bf16 pre-BN intermediate
        st = jnp.concatenate([jnp.sum(x, axis=0, keepdims=True),
                              jnp.sum(x * x, axis=0, keepdims=True)], axis=0)
        st_ref[...] = st[None]                           # single (1, 2, C) store
    return kernel


def _make_head_kernel(apply_leaky):
    """Deferred LeakyReLU + Cout=1 conv (VPU mul + XLU lane-reduce) + sigmoid."""
    def kernel(p_ref, w_ref, b_ref, o_ref):
        x = p_ref[...].astype(jnp.float32)               # (TM, K)
        if apply_leaky:
            x = _leaky_f32(x)
        s = jnp.sum(x * w_ref[...], axis=1, keepdims=True)   # (TM, 1)
        o_ref[...] = jax.nn.sigmoid(s + b_ref[...])
    return kernel


# ----------------------------------------------------------------------------
# Pallas-call wrappers (tiled over M, grid marked "parallel")
# ----------------------------------------------------------------------------
def _pad_rows(patches, tm):
    m = patches.shape[0]
    mpad = _round_up(m, tm)
    if mpad != m:
        patches = jnp.pad(patches, ((0, mpad - m), (0, 0)))
    return patches, mpad


def conv_bias_act_layer(patches, w_mat, bias):
    m, k = patches.shape
    c = w_mat.shape[1]
    tm = _row_tile(m)
    patches, mpad = _pad_rows(patches, tm)
    return pl.pallas_call(
        _conv_bias_act_kernel,
        out_shape=jax.ShapeDtypeStruct((mpad, c), jnp.bfloat16),
        grid=(mpad // tm,),
        in_specs=[pl.BlockSpec((tm, k), lambda i: (i, 0)),
                  pl.BlockSpec((k, c), lambda i: (0, 0)),
                  pl.BlockSpec((1, c), lambda i: (0, 0))],
        out_specs=pl.BlockSpec((tm, c), lambda i: (i, 0)),
        compiler_params=_PAR,
    )(patches, w_mat, bias)


def conv_stats_layer(patches, w_mat, apply_leaky):
    m, k = patches.shape
    c = w_mat.shape[1]
    tm = _row_tile(m)
    patches, mpad = _pad_rows(patches, tm)     # zero rows: no effect on sums
    t = mpad // tm
    conv, stats = pl.pallas_call(
        _make_conv_stats_kernel(apply_leaky),
        out_shape=(jax.ShapeDtypeStruct((mpad, c), jnp.bfloat16),
                   jax.ShapeDtypeStruct((t, 2, c), jnp.float32)),
        grid=(t,),
        in_specs=[pl.BlockSpec((tm, k), lambda i: (i, 0)),
                  pl.BlockSpec((k, c), lambda i: (0, 0))],
        out_specs=(pl.BlockSpec((tm, c), lambda i: (i, 0)),
                   pl.BlockSpec((1, 2, c), lambda i: (i, 0, 0))),
        compiler_params=_PAR,
    )(patches, w_mat)
    s1 = jnp.sum(stats[:, 0, :], axis=0)       # tiny f32 reduction over tiles
    s2 = jnp.sum(stats[:, 1, :], axis=0)
    return conv, s1, s2


def head_layer(patches, w_row, bias, apply_leaky):
    m, k = patches.shape
    tm = _row_tile(m)
    patches, mpad = _pad_rows(patches, tm)
    out = pl.pallas_call(
        _make_head_kernel(apply_leaky),
        out_shape=jax.ShapeDtypeStruct((mpad, 1), jnp.float32),
        grid=(mpad // tm,),
        in_specs=[pl.BlockSpec((tm, k), lambda i: (i, 0)),
                  pl.BlockSpec((1, k), lambda i: (0, 0)),
                  pl.BlockSpec((1, 1), lambda i: (0, 0))],
        out_specs=pl.BlockSpec((tm, 1), lambda i: (i, 0)),
        compiler_params=_PAR,
    )(patches, w_row, bias)
    return out[:m]


# ----------------------------------------------------------------------------
# Glue: im2col (XLA), parameter prep, layer orchestration
# ----------------------------------------------------------------------------
def extract_patches_nhwc(x, ksize, stride, pad):
    """im2col; K ordering (c, kh, kw) matches the PyTorch Conv2d weight flatten.

    TODO(synk): replace with in-kernel halo-DMA patch assembly (see header)."""
    n, h, w, c = x.shape
    xp = jnp.pad(x, ((0, 0), (pad, pad), (pad, pad), (0, 0)))
    ho = (h + 2 * pad - ksize) // stride + 1
    wo = (w + 2 * pad - ksize) // stride + 1
    cols = []
    for kh in range(ksize):
        for kw in range(ksize):
            cols.append(xp[:, kh:kh + stride * (ho - 1) + 1:stride,
                           kw:kw + stride * (wo - 1) + 1:stride, :])
    stacked = jnp.stack(cols, axis=-1)                   # (N,Ho,Wo,C,k*k)
    patches = stacked.reshape(n * ho * wo, c * ksize * ksize)
    return patches, (n, ho, wo)


def init_discriminator_params(key, in_channels, base):
    """Deterministic synthetic parameters matching the module's shapes."""
    cfgs = [
        # (cin, cout, stride, use_bias, use_bn)
        (in_channels, base,     2, True,  False),
        (base,        base * 2, 2, False, True),
        (base * 2,    base * 4, 2, False, True),
        (base * 4,    base * 4, 1, False, True),
        (base * 4,    1,        1, True,  False),
    ]
    params = []
    for cin, cout, stride, use_bias, use_bn in cfgs:
        key, kw, kb = jax.random.split(key, 3)
        w = 0.02 * jax.random.normal(kw, (cout, cin, KSIZE, KSIZE), jnp.float32)
        b = (0.01 * jax.random.normal(kb, (1, cout), jnp.float32)
             if use_bias else jnp.zeros((1, cout), jnp.float32))
        gamma = jnp.ones((1, cout), jnp.float32)
        beta = jnp.zeros((1, cout), jnp.float32)
        params.append(dict(w=w, b=b, gamma=gamma, beta=beta, stride=stride,
                           use_bias=use_bias, use_bn=use_bn))
    return params


def discriminator_forward(x_nchw, params):
    x = jnp.transpose(x_nchw, (0, 2, 3, 1)).astype(jnp.bfloat16)   # NCHW -> NHWC
    pending_leaky = False       # deferred LeakyReLU of the previous BN layer
    n_layers = len(params)
    for li, p in enumerate(params):
        cout = p["w"].shape[0]
        patches, (n, ho, wo) = extract_patches_nhwc(x, KSIZE, p["stride"], 1)
        m, k = patches.shape
        # Cout kept at true width: HBM-bound layers -> masked narrow stores beat
        # 4-16x padded writeback (and never pad N to 256 to "fill" the MXU).
        w_mat = p["w"].reshape(cout, -1).T               # (K, Cout), (c,kh,kw)

        if li == n_layers - 1:
            # Fused head: layer-4's deferred LeakyReLU + Cout=1 conv + bias +
            # sigmoid in one kernel; (TM, K) patch layout, no transpose glue.
            y = head_layer(patches,
                           w_mat.reshape(1, k).astype(jnp.float32),
                           p["b"].astype(jnp.float32).reshape(1, 1),
                           pending_leaky)
            x = y.reshape(n, ho, wo, 1)
            continue

        w_bf = w_mat.astype(jnp.bfloat16)

        if p["use_bn"]:
            # Pass 1: conv (+ deferred LeakyReLU on the patch tile) + per-tile
            # channel sums -> exact training-mode batch statistics under tiling.
            conv, s1, s2 = conv_stats_layer(patches, w_bf, pending_leaky)
            mean = s1 / m
            var = jnp.maximum(s2 / m - mean * mean, 0.0)   # biased variance
            scale = p["gamma"].reshape(-1) * jax.lax.rsqrt(var + EPS)
            shift = p["beta"].reshape(-1) - mean * scale
            # Fold the BN affine into the next layer's im2col producer (fused by
            # XLA into the patch gather); the LeakyReLU is deferred into the next
            # Pallas kernel (leaky(0)==0 commutes with the zero spatial padding),
            # so the separate bn_act pass and its HBM round trip are eliminated.
            u = conv[:m].astype(jnp.float32) * scale + shift
            x = u.astype(jnp.bfloat16).reshape(n, ho, wo, cout)
            pending_leaky = True
        else:
            act = conv_bias_act_layer(patches, w_bf, p["b"].astype(jnp.float32))
            x = act[:m].reshape(n, ho, wo, cout)
            pending_leaky = False

    return jnp.transpose(x, (0, 3, 1, 2)).astype(jnp.float32)      # back to NCHW


if __name__ == "__main__":
    # Small shapes: batch=2, in_channels=4, base channels=8, spatial=32
    # (spatial must be >= 32 so that all five 4x4 convs leave a valid output).
    B, C_IN, H, W = 2, 4, 32, 32
    BASE = 8

    key = jax.random.PRNGKey(0)
    key, kx = jax.random.split(key)
    x = jax.random.normal(kx, (B, C_IN, H, W), jnp.float32)

    params = init_discriminator_params(key, C_IN, BASE)

    fwd = jax.jit(lambda inp: discriminator_forward(inp, params))
    y = fwd(x)
    jax.block_until_ready(y)

    assert y.shape == (B, 1, 2, 2), y.shape
    assert bool(jnp.all(jnp.isfinite(y)))
    assert bool(jnp.all((y >= 0.0) & (y <= 1.0)))  # sigmoid output range
    print("KERNEL_OK")
</pallas_src>

<mosaic_0001>
module attributes {stable_mosaic.version = 11 : i64} {
  func.func @_conv_bias_act_kernel(%arg0: i32, %arg1: memref<256x64xbf16, #tpu.memory_space<vmem>>, %arg2: memref<64x8xbf16, #tpu.memory_space<vmem>>, %arg3: memref<1x8xf32, #tpu.memory_space<vmem>>, %arg4: memref<256x8xbf16, #tpu.memory_space<vmem>>) attributes {dimension_semantics = [#tpu.dimension_semantics<parallel>], iteration_bounds = array<i64: 2>, scalar_prefetch = 0 : i64, scratch_operands = 0 : i64, tpu.core_type = #tpu.core_type<tc>, window_params = [{transform_indices = @transform_0, window_bounds = array<i64: 256, 64>}, {pipeline_mode = #tpu.pipeline_mode<synchronous>, transform_indices = @transform_1, window_bounds = array<i64: 64, 8>}, {pipeline_mode = #tpu.pipeline_mode<synchronous>, transform_indices = @transform_2, window_bounds = array<i64: 1, 8>}, {transform_indices = @transform_3, window_bounds = array<i64: 256, 8>}]} {
    %c0 = arith.constant 0 : index
    %c0_0 = arith.constant 0 : index
    %0 = vector.load %arg1[%c0, %c0_0] : memref<256x64xbf16, #tpu.memory_space<vmem>>, vector<256x64xbf16>
    %c0_1 = arith.constant 0 : index
    %c0_2 = arith.constant 0 : index
    %1 = vector.load %arg2[%c0_1, %c0_2] : memref<64x8xbf16, #tpu.memory_space<vmem>>, vector<64x8xbf16>
    %cst = arith.constant dense<0.000000e+00> : vector<256x8xf32>
    %2 = tpu.matmul %0, %1, %cst {dimension_numbers = #tpu.dot_dimension_numbers<[1], [0], [0], [1], [0, 0, 1, 1], [], []>} : vector<256x64xbf16>, vector<64x8xbf16>, vector<256x8xf32> -> vector<256x8xf32>
    %c0_3 = arith.constant 0 : index
    %c0_4 = arith.constant 0 : index
    %3 = vector.load %arg3[%c0_3, %c0_4] : memref<1x8xf32, #tpu.memory_space<vmem>>, vector<1x8xf32>
    %4 = vector.broadcast %3 : vector<1x8xf32> to vector<256x8xf32>
    %5 = arith.addf %2, %4 : vector<256x8xf32>
    %cst_5 = arith.constant 0.000000e+00 : f32
    %6 = vector.broadcast %cst_5 : f32 to vector<256x8xf32>
    %7 = arith.cmpf ogt, %5, %6 : vector<256x8xf32>
    %cst_6 = arith.constant 2.000000e-01 : f32
    %8 = vector.broadcast %cst_6 : f32 to vector<256x8xf32>
    %9 = arith.mulf %8, %5 : vector<256x8xf32>
    %10 = arith.select %7, %5, %9 : vector<256x8xi1>, vector<256x8xf32>
    %11 = arith.truncf %10 : vector<256x8xf32> to vector<256x8xbf16>
    %c0_7 = arith.constant 0 : index
    %c0_8 = arith.constant 0 : index
    %12 = vector.load %arg4[%c0_7, %c0_8] : memref<256x8xbf16, #tpu.memory_space<vmem>>, vector<256x8xbf16>
    tpu.vector_store %arg4[%c0_7, %c0_8], %11 {strides = array<i32>} : memref<256x8xbf16, #tpu.memory_space<vmem>>, vector<256x8xbf16>,
    return
  }
  func.func @transform_0(%arg0: i32) -> (i32, i32) {
    %c0_i32 = arith.constant 0 : i32
    %c0_i32_0 = arith.constant 0 : i32
    return %arg0, %c0_i32 : i32, i32
  }
  func.func @transform_1(%arg0: i32) -> (i32, i32) {
    %c0_i32 = arith.constant 0 : i32
    %c0_i32_0 = arith.constant 0 : i32
    %c0_i32_1 = arith.constant 0 : i32
    return %c0_i32, %c0_i32_0 : i32, i32
  }
  func.func @transform_2(%arg0: i32) -> (i32, i32) {
    %c0_i32 = arith.constant 0 : i32
    %c0_i32_0 = arith.constant 0 : i32
    %c0_i32_1 = arith.constant 0 : i32
    return %c0_i32, %c0_i32_0 : i32, i32
  }
  func.func @transform_3(%arg0: i32) -> (i32, i32) {
    %c0_i32 = arith.constant 0 : i32
    %c0_i32_0 = arith.constant 0 : i32
    return %arg0, %c0_i32 : i32, i32
  }
}

module attributes {stable_mosaic.version = 11 : i64} {
  func.func @kernel(%arg0: i32, %arg1: memref<128x128xbf16, #tpu.memory_space<vmem>>, %arg2: memref<128x16xbf16, #tpu.memory_space<vmem>>, %arg3: memref<128x16xbf16, #tpu.memory_space<vmem>>, %arg4: memref<1x2x16xf32, #tpu.memory_space<vmem>>) attributes {dimension_semantics = [#tpu.dimension_semantics<parallel>], iteration_bounds = array<i64: 1>, scalar_prefetch = 0 : i64, scratch_operands = 0 : i64, tpu.core_type = #tpu.core_type<tc>, window_params = [{transform_indices = @transform_0, window_bounds = array<i64: 128, 128>}, {pipeline_mode = #tpu.pipeline_mode<synchronous>, transform_indices = @transform_1, window_bounds = array<i64: 128, 16>}, {transform_indices = @transform_2, window_bounds = array<i64: 128, 16>}, {transform_indices = @transform_3, window_bounds = array<i64: 1, 2, 16>}]} {
    %c0 = arith.constant 0 : index
    %c0_0 = arith.constant 0 : index
    %0 = vector.load %arg1[%c0, %c0_0] : memref<128x128xbf16, #tpu.memory_space<vmem>>, vector<128x128xbf16>
    %c0_1 = arith.constant 0 : index
    %c0_2 = arith.constant 0 : index
    %1 = vector.load %arg2[%c0_1, %c0_2] : memref<128x16xbf16, #tpu.memory_space<vmem>>, vector<128x16xbf16>
    %cst = arith.constant dense<0.000000e+00> : vector<128x16xf32>
    %2 = tpu.matmul %0, %1, %cst {dimension_numbers = #tpu.dot_dimension_numbers<[1], [0], [0], [1], [0, 0, 1, 1], [], []>} : vector<128x128xbf16>, vector<128x16xbf16>, vector<128x16xf32> -> vector<128x16xf32>
    %3 = arith.truncf %2 : vector<128x16xf32> to vector<128x16xbf16>
    %c0_3 = arith.constant 0 : index
    %c0_4 = arith.constant 0 : index
    %4 = vector.load %arg3[%c0_3, %c0_4] : memref<128x16xbf16, #tpu.memory_space<vmem>>, vector<128x16xbf16>
    tpu.vector_store %arg3[%c0_3, %c0_4], %3 {strides = array<i32>} : memref<128x16xbf16, #tpu.memory_space<vmem>>, vector<128x16xbf16>,
    %cst_5 = arith.constant dense<0.000000e+00> : vector<16xf32>
    %5 = vector.multi_reduction <add>, %2, %cst_5 [0] : vector<128x16xf32> to vector<16xf32>
    %6 = vector.shape_cast %5 : vector<16xf32> to vector<1x16xf32>
    %7 = arith.mulf %2, %2 : vector<128x16xf32>
    %cst_6 = arith.constant dense<0.000000e+00> : vector<16xf32>
    %8 = vector.multi_reduction <add>, %7, %cst_6 [0] : vector<128x16xf32> to vector<16xf32>
    %9 = vector.shape_cast %8 : vector<16xf32> to vector<1x16xf32>
    %10 = tpu.concatenate %6, %9 in 0 : vector<1x16xf32>, vector<1x16xf32> -> vector<2x16xf32>
    %11 = vector.shape_cast %10 : vector<2x16xf32> to vector<1x2x16xf32>
    %c0_7 = arith.constant 0 : index
    %c0_8 = arith.constant 0 : index
    %c0_9 = arith.constant 0 : index
    %12 = vector.load %arg4[%c0_7, %c0_8, %c0_9] : memref<1x2x16xf32, #tpu.memory_space<vmem>>, vector<1x2x16xf32>
    tpu.vector_store %arg4[%c0_7, %c0_8, %c0_9], %11 {strides = array<i32>} : memref<1x2x16xf32, #tpu.memory_space<vmem>>, vector<1x2x16xf32>,
    return
  }
  func.func @transform_0(%arg0: i32) -> (i32, i32) {
    %c0_i32 = arith.constant 0 : i32
    %c0_i32_0 = arith.constant 0 : i32
    return %arg0, %c0_i32 : i32, i32
  }
  func.func @transform_1(%arg0: i32) -> (i32, i32) {
    %c0_i32 = arith.constant 0 : i32
    %c0_i32_0 = arith.constant 0 : i32
    %c0_i32_1 = arith.constant 0 : i32
    return %c0_i32, %c0_i32_0 : i32, i32
  }
  func.func @transform_2(%arg0: i32) -> (i32, i32) {
    %c0_i32 = arith.constant 0 : i32
    %c0_i32_0 = arith.constant 0 : i32
    return %arg0, %c0_i32 : i32, i32
  }
  func.func @transform_3(%arg0: i32) -> (i32, i32, i32) {
    %c0_i32 = arith.constant 0 : i32
    %c0_i32_0 = arith.constant 0 : i32
    %c0_i32_1 = arith.constant 0 : i32
    return %arg0, %c0_i32, %c0_i32_0 : i32, i32, i32
  }
}

module attributes {stable_mosaic.version = 11 : i64} {
  func.func @kernel(%arg0: i32, %arg1: memref<32x256xbf16, #tpu.memory_space<vmem>>, %arg2: memref<256x32xbf16, #tpu.memory_space<vmem>>, %arg3: memref<32x32xbf16, #tpu.memory_space<vmem>>, %arg4: memref<1x2x32xf32, #tpu.memory_space<vmem>>) attributes {dimension_semantics = [#tpu.dimension_semantics<parallel>], iteration_bounds = array<i64: 1>, scalar_prefetch = 0 : i64, scratch_operands = 0 : i64, tpu.core_type = #tpu.core_type<tc>, window_params = [{transform_indices = @transform_0, window_bounds = array<i64: 32, 256>}, {pipeline_mode = #tpu.pipeline_mode<synchronous>, transform_indices = @transform_1, window_bounds = array<i64: 256, 32>}, {transform_indices = @transform_2, window_bounds = array<i64: 32, 32>}, {transform_indices = @transform_3, window_bounds = array<i64: 1, 2, 32>}]} {
    %c0 = arith.constant 0 : index
    %c0_0 = arith.constant 0 : index
    %0 = vector.load %arg1[%c0, %c0_0] : memref<32x256xbf16, #tpu.memory_space<vmem>>, vector<32x256xbf16>
    %1 = arith.extf %0 : vector<32x256xbf16> to vector<32x256xf32>
    %cst = arith.constant 0.000000e+00 : f32
    %2 = vector.broadcast %cst : f32 to vector<32x256xf32>
    %3 = arith.cmpf ogt, %1, %2 : vector<32x256xf32>
    %cst_1 = arith.constant 2.000000e-01 : f32
    %4 = vector.broadcast %cst_1 : f32 to vector<32x256xf32>
    %5 = arith.mulf %4, %1 : vector<32x256xf32>
    %6 = arith.select %3, %1, %5 : vector<32x256xi1>, vector<32x256xf32>
    %7 = arith.truncf %6 : vector<32x256xf32> to vector<32x256xbf16>
    %c0_2 = arith.constant 0 : index
    %c0_3 = arith.constant 0 : index
    %8 = vector.load %arg2[%c0_2, %c0_3] : memref<256x32xbf16, #tpu.memory_space<vmem>>, vector<256x32xbf16>
    %cst_4 = arith.constant dense<0.000000e+00> : vector<32x32xf32>
    %9 = tpu.matmul %7, %8, %cst_4 {dimension_numbers = #tpu.dot_dimension_numbers<[1], [0], [0], [1], [0, 0, 1, 1], [], []>} : vector<32x256xbf16>, vector<256x32xbf16>, vector<32x32xf32> -> vector<32x32xf32>
    %10 = arith.truncf %9 : vector<32x32xf32> to vector<32x32xbf16>
    %c0_5 = arith.constant 0 : index
    %c0_6 = arith.constant 0 : index
    %11 = vector.load %arg3[%c0_5, %c0_6] : memref<32x32xbf16, #tpu.memory_space<vmem>>, vector<32x32xbf16>
    tpu.vector_store %arg3[%c0_5, %c0_6], %10 {strides = array<i32>} : memref<32x32xbf16, #tpu.memory_space<vmem>>, vector<32x32xbf16>,
    %cst_7 = arith.constant dense<0.000000e+00> : vector<32xf32>
    %12 = vector.multi_reduction <add>, %9, %cst_7 [0] : vector<32x32xf32> to vector<32xf32>
    %13 = vector.shape_cast %12 : vector<32xf32> to vector<1x32xf32>
    %14 = arith.mulf %9, %9 : vector<32x32xf32>
    %cst_8 = arith.constant dense<0.000000e+00> : vector<32xf32>
    %15 = vector.multi_reduction <add>, %14, %cst_8 [0] : vector<32x32xf32> to vector<32xf32>
    %16 = vector.shape_cast %15 : vector<32xf32> to vector<1x32xf32>
    %17 = tpu.concatenate %13, %16 in 0 : vector<1x32xf32>, vector<1x32xf32> -> vector<2x32xf32>
    %18 = vector.shape_cast %17 : vector<2x32xf32> to vector<1x2x32xf32>
    %c0_9 = arith.constant 0 : index
    %c0_10 = arith.constant 0 : index
    %c0_11 = arith.constant 0 : index
    %19 = vector.load %arg4[%c0_9, %c0_10, %c0_11] : memref<1x2x32xf32, #tpu.memory_space<vmem>>, vector<1x2x32xf32>
    tpu.vector_store %arg4[%c0_9, %c0_10, %c0_11], %18 {strides = array<i32>} : memref<1x2x32xf32, #tpu.memory_space<vmem>>, vector<1x2x32xf32>,
    return
  }
  func.func @transform_0(%arg0: i32) -> (i32, i32) {
    %c0_i32 = arith.constant 0 : i32
    %c0_i32_0 = arith.constant 0 : i32
    return %arg0, %c0_i32 : i32, i32
  }
  func.func @transform_1(%arg0: i32) -> (i32, i32) {
    %c0_i32 = arith.constant 0 : i32
    %c0_i32_0 = arith.constant 0 : i32
    %c0_i32_1 = arith.constant 0 : i32
    return %c0_i32, %c0_i32_0 : i32, i32
  }
  func.func @transform_2(%arg0: i32) -> (i32, i32) {
    %c0_i32 = arith.constant 0 : i32
    %c0_i32_0 = arith.constant 0 : i32
    return %arg0, %c0_i32 : i32, i32
  }
  func.func @transform_3(%arg0: i32) -> (i32, i32, i32) {
    %c0_i32 = arith.constant 0 : i32
    %c0_i32_0 = arith.constant 0 : i32
    %c0_i32_1 = arith.constant 0 : i32
    return %arg0, %c0_i32, %c0_i32_0 : i32, i32, i32
  }
}

module attributes {stable_mosaic.version = 11 : i64} {
  func.func @kernel(%arg0: i32, %arg1: memref<32x512xbf16, #tpu.memory_space<vmem>>, %arg2: memref<512x32xbf16, #tpu.memory_space<vmem>>, %arg3: memref<32x32xbf16, #tpu.memory_space<vmem>>, %arg4: memref<1x2x32xf32, #tpu.memory_space<vmem>>) attributes {dimension_semantics = [#tpu.dimension_semantics<parallel>], iteration_bounds = array<i64: 1>, scalar_prefetch = 0 : i64, scratch_operands = 0 : i64, tpu.core_type = #tpu.core_type<tc>, window_params = [{transform_indices = @transform_0, window_bounds = array<i64: 32, 512>}, {pipeline_mode = #tpu.pipeline_mode<synchronous>, transform_indices = @transform_1, window_bounds = array<i64: 512, 32>}, {transform_indices = @transform_2, window_bounds = array<i64: 32, 32>}, {transform_indices = @transform_3, window_bounds = array<i64: 1, 2, 32>}]} {
    %c0 = arith.constant 0 : index
    %c0_0 = arith.constant 0 : index
    %0 = vector.load %arg1[%c0, %c0_0] : memref<32x512xbf16, #tpu.memory_space<vmem>>, vector<32x512xbf16>
    %1 = arith.extf %0 : vector<32x512xbf16> to vector<32x512xf32>
    %cst = arith.constant 0.000000e+00 : f32
    %2 = vector.broadcast %cst : f32 to vector<32x512xf32>
    %3 = arith.cmpf ogt, %1, %2 : vector<32x512xf32>
    %cst_1 = arith.constant 2.000000e-01 : f32
    %4 = vector.broadcast %cst_1 : f32 to vector<32x512xf32>
    %5 = arith.mulf %4, %1 : vector<32x512xf32>
    %6 = arith.select %3, %1, %5 : vector<32x512xi1>, vector<32x512xf32>
    %7 = arith.truncf %6 : vector<32x512xf32> to vector<32x512xbf16>
    %c0_2 = arith.constant 0 : index
    %c0_3 = arith.constant 0 : index
    %8 = vector.load %arg2[%c0_2, %c0_3] : memref<512x32xbf16, #tpu.memory_space<vmem>>, vector<512x32xbf16>
    %cst_4 = arith.constant dense<0.000000e+00> : vector<32x32xf32>
    %9 = tpu.matmul %7, %8, %cst_4 {dimension_numbers = #tpu.dot_dimension_numbers<[1], [0], [0], [1], [0, 0, 1, 1], [], []>} : vector<32x512xbf16>, vector<512x32xbf16>, vector<32x32xf32> -> vector<32x32xf32>
    %10 = arith.truncf %9 : vector<32x32xf32> to vector<32x32xbf16>
    %c0_5 = arith.constant 0 : index
    %c0_6 = arith.constant 0 : index
    %11 = vector.load %arg3[%c0_5, %c0_6] : memref<32x32xbf16, #tpu.memory_space<vmem>>, vector<32x32xbf16>
    tpu.vector_store %arg3[%c0_5, %c0_6], %10 {strides = array<i32>} : memref<32x32xbf16, #tpu.memory_space<vmem>>, vector<32x32xbf16>,
    %cst_7 = arith.constant dense<0.000000e+00> : vector<32xf32>
    %12 = vector.multi_reduction <add>, %9, %cst_7 [0] : vector<32x32xf32> to vector<32xf32>
    %13 = vector.shape_cast %12 : vector<32xf32> to vector<1x32xf32>
    %14 = arith.mulf %9, %9 : vector<32x32xf32>
    %cst_8 = arith.constant dense<0.000000e+00> : vector<32xf32>
    %15 = vector.multi_reduction <add>, %14, %cst_8 [0] : vector<32x32xf32> to vector<32xf32>
    %16 = vector.shape_cast %15 : vector<32xf32> to vector<1x32xf32>
    %17 = tpu.concatenate %13, %16 in 0 : vector<1x32xf32>, vector<1x32xf32> -> vector<2x32xf32>
    %18 = vector.shape_cast %17 : vector<2x32xf32> to vector<1x2x32xf32>
    %c0_9 = arith.constant 0 : index
    %c0_10 = arith.constant 0 : index
    %c0_11 = arith.constant 0 : index
    %19 = vector.load %arg4[%c0_9, %c0_10, %c0_11] : memref<1x2x32xf32, #tpu.memory_space<vmem>>, vector<1x2x32xf32>
    tpu.vector_store %arg4[%c0_9, %c0_10, %c0_11], %18 {strides = array<i32>} : memref<1x2x32xf32, #tpu.memory_space<vmem>>, vector<1x2x32xf32>,
    return
  }
  func.func @transform_0(%arg0: i32) -> (i32, i32) {
    %c0_i32 = arith.constant 0 : i32
    %c0_i32_0 = arith.constant 0 : i32
    return %arg0, %c0_i32 : i32, i32
  }
  func.func @transform_1(%arg0: i32) -> (i32, i32) {
    %c0_i32 = arith.constant 0 : i32
    %c0_i32_0 = arith.constant 0 : i32
    %c0_i32_1 = arith.constant 0 : i32
    return %c0_i32, %c0_i32_0 : i32, i32
  }
  func.func @transform_2(%arg0: i32) -> (i32, i32) {
    %c0_i32 = arith.constant 0 : i32
    %c0_i32_0 = arith.constant 0 : i32
    return %arg0, %c0_i32 : i32, i32
  }
  func.func @transform_3(%arg0: i32) -> (i32, i32, i32) {
    %c0_i32 = arith.constant 0 : i32
    %c0_i32_0 = arith.constant 0 : i32
    %c0_i32_1 = arith.constant 0 : i32
    return %arg0, %c0_i32, %c0_i32_0 : i32, i32, i32
  }
}

module attributes {stable_mosaic.version = 11 : i64} {
  func.func @kernel(%arg0: i32, %arg1: memref<16x512xbf16, #tpu.memory_space<vmem>>, %arg2: memref<1x512xf32, #tpu.memory_space<vmem>>, %arg3: memref<1x1xf32, #tpu.memory_space<vmem>>, %arg4: memref<16x1xf32, #tpu.memory_space<vmem>>) attributes {dimension_semantics = [#tpu.dimension_semantics<parallel>], iteration_bounds = array<i64: 1>, scalar_prefetch = 0 : i64, scratch_operands = 0 : i64, tpu.core_type = #tpu.core_type<tc>, window_params = [{transform_indices = @transform_0, window_bounds = array<i64: 16, 512>}, {pipeline_mode = #tpu.pipeline_mode<synchronous>, transform_indices = @transform_1, window_bounds = array<i64: 1, 512>}, {pipeline_mode = #tpu.pipeline_mode<synchronous>, transform_indices = @transform_2, window_bounds = array<i64: 1, 1>}, {transform_indices = @transform_3, window_bounds = array<i64: 16, 1>}]} {
    %c0 = arith.constant 0 : index
    %c0_0 = arith.constant 0 : index
    %0 = vector.load %arg1[%c0, %c0_0] : memref<16x512xbf16, #tpu.memory_space<vmem>>, vector<16x512xbf16>
    %1 = arith.extf %0 : vector<16x512xbf16> to vector<16x512xf32>
    %cst = arith.constant 0.000000e+00 : f32
    %2 = vector.broadcast %cst : f32 to vector<16x512xf32>
    %3 = arith.cmpf ogt, %1, %2 : vector<16x512xf32>
    %cst_1 = arith.constant 2.000000e-01 : f32
    %4 = vector.broadcast %cst_1 : f32 to vector<16x512xf32>
    %5 = arith.mulf %4, %1 : vector<16x512xf32>
    %6 = arith.select %3, %1, %5 : vector<16x512xi1>, vector<16x512xf32>
    %c0_2 = arith.constant 0 : index
    %c0_3 = arith.constant 0 : index
    %7 = vector.load %arg2[%c0_2, %c0_3] : memref<1x512xf32, #tpu.memory_space<vmem>>, vector<1x512xf32>
    %8 = vector.broadcast %7 : vector<1x512xf32> to vector<16x512xf32>
    %9 = arith.mulf %6, %8 : vector<16x512xf32>
    %cst_4 = arith.constant dense<0.000000e+00> : vector<16xf32>
    %10 = vector.multi_reduction <add>, %9, %cst_4 [1] : vector<16x512xf32> to vector<16xf32>
    %11 = vector.shape_cast %10 : vector<16xf32> to vector<16x1xf32>
    %c0_5 = arith.constant 0 : index
    %c0_6 = arith.constant 0 : index
    %12 = vector.load %arg3[%c0_5, %c0_6] : memref<1x1xf32, #tpu.memory_space<vmem>>, vector<1x1xf32>
    %13 = vector.broadcast %12 : vector<1x1xf32> to vector<16x1xf32>
    %14 = arith.addf %11, %13 : vector<16x1xf32>
    %15 = arith.negf %14 : vector<16x1xf32>
    %16 = math.exp %15 : vector<16x1xf32>
    %cst_7 = arith.constant 1.000000e+00 : f32
    %17 = vector.broadcast %cst_7 : f32 to vector<16x1xf32>
    %18 = arith.addf %17, %16 : vector<16x1xf32>
    %19 = arith.divf %17, %18 : vector<16x1xf32>
    %c0_8 = arith.constant 0 : index
    %c0_9 = arith.constant 0 : index
    %20 = vector.load %arg4[%c0_8, %c0_9] : memref<16x1xf32, #tpu.memory_space<vmem>>, vector<16x1xf32>
    tpu.vector_store %arg4[%c0_8, %c0_9], %19 {strides = array<i32>} : memref<16x1xf32, #tpu.memory_space<vmem>>, vector<16x1xf32>,
    return
  }
  func.func @transform_0(%arg0: i32) -> (i32, i32) {
    %c0_i32 = arith.constant 0 : i32
    %c0_i32_0 = arith.constant 0 : i32
    return %arg0, %c0_i32 : i32, i32
  }
  func.func @transform_1(%arg0: i32) -> (i32, i32) {
    %c0_i32 = arith.constant 0 : i32
    %c0_i32_0 = arith.constant 0 : i32
    %c0_i32_1 = arith.constant 0 : i32
    return %c0_i32, %c0_i32_0 : i32, i32
  }
  func.func @transform_2(%arg0: i32) -> (i32, i32) {
    %c0_i32 = arith.constant 0 : i32
    %c0_i32_0 = arith.constant 0 : i32
    %c0_i32_1 = arith.constant 0 : i32
    return %c0_i32, %c0_i32_0 : i32, i32
  }
  func.func @transform_3(%arg0: i32) -> (i32, i32) {
    %c0_i32 = arith.constant 0 : i32
    %c0_i32_0 = arith.constant 0 : i32
    return %arg0, %c0_i32 : i32, i32
  }
}

</mosaic_0001>

<bundles_post_ra>
// kernel: _lambda_.5
= control target key start
LH: loop header
LB: loop body
LE: loop exit
PB: predicated region body
PF: predicated region fallthrough
CT: control target
= control target key end

     0   :  { %s1085_s12 = smov 0   ;;  %s1260_s0 = inlined_call_operand.vmem [shape: bf16[512,64], index: 0, kind: input, shape index: {}]   ;;  %s1261_s1 = inlined_call_operand.vmem [shape: bf16[64,8], index: 1, kind: input, shape index: {}]   ;;  %s1262_s2 = inlined_call_operand.vmem [shape: f32[1,8], index: 2, kind: input, shape index: {}]   ;;  %s1263_s3 = inlined_call_operand.vmem [shape: bf16[512,8], index: 3, kind: output, shape index: {}]  }
   0x1 LB: > { %s849_s13 = sadd.s32 4294967295, %s1063_s12   ;;  %p853_p0 = scmp.ge.s32.totalorder %s1063_s12, 1  ;;  %s1063_s12 = sphi %s1085_s12, %s13_s12  }
   0x2   : > { %p138_p1 = scmp.lt.s32.totalorder %s1063_s12, 3 }
   0x4   : > { %p139_p2 = pnand %p853_p0, %p138_p1 }
   0x5   : > { %s854_s16 = sshll.u32 (!%p139_p2), %s849_s13, 5 }
   0x6   : > { %142 = sbr.rel (%p139_p2) target bundleno = 268 (0x10c), region = 32  ;;  %p163_p3 = scmp.lt.s32.totalorder (!%p139_p2), %s854_s16, 63 }
   0xb   : > { %v1037_v0 = vld [vmem:[%s1261_s1 + $0x18] sm:$0xff]   ;;  %v1038_v1 = vld [vmem:[%s1261_s1 + $0x10] sm:$0xff]   ;;  %s1265_s16 = smov (!%p163_p3, %s854_s16), 63  ;;  %v1039_v2 = vld [vmem:[%s1261_s1 + $0x8] sm:$0xff]   ;;  %vm326_vm0 = vcmask 523264   ;;  %vm760_vm3 = vcmask 60416  }
   0xc   : > { %981 = vmatprep.subr.bf16.mxu0 %v1037_v0  ;;  %1021 = vmatprep.subr.bf16.mxu1 %v1037_v0  ;;  %s855_s21 = sshll.u32 %s1265_s16, 2  ;;  %v1040_v3 = vld [vmem:[%s1261_s1] sm:$0xff]  }
   0xd   : > { %982 = vmatpush3.bf16.msra.mxu0 %v1037_v0  ;;  %1025 = vmatpush3.bf16.msra.mxu1 %v1037_v0  ;;  %s1113_s26 = scalar_lea.vmem %s1260_s0, %s855_s21  ;;  %v1150_v20 = vld [vmem:[%s1262_s2] ss:$0 sm:$0xff]  ;;  %s1161_s4 = scalar_lea.vmem %s1263_s3, %s855_s21 }
   0xe   : > { %983 = vmatprep.subr.bf16.mxu0 %v1038_v1  ;;  %1022 = vmatprep.subr.bf16.mxu1 %v1038_v1  ;;  %v1041_v4 = vld [vmem:[%s1113_s26] sm:$0xff]   ;;  %v1043_v6 = vld [vmem:[%s1113_s26 + $0x8] sm:$0xff]   ;;  %v1045_v8 = vld [vmem:[%s1113_s26 + $0x10] sm:$0xff]  }
   0xf   : > { %v1042_v5 = vld [vmem:[%s1113_s26 + $0x40] sm:$0xff]   ;;  %989 = vmatprep.mubr.msk.bf16.mxu0 %vm326_vm0, %v1041_v4  ;;  %v1044_v7 = vld [vmem:[%s1113_s26 + $0x48] sm:$0xff]   ;;  %v1046_v9 = vld [vmem:[%s1113_s26 + $0x50] sm:$0xff]  }
  0x10   : > { %1005 = vmatprep.mubr.msk.bf16.mxu1 %vm326_vm0, %v1042_v5  ;;  %v1047_v10 = vld [vmem:[%s1113_s26 + $0x18] sm:$0xff]   ;;  %v1049_v12 = vld [vmem:[%s1113_s26 + $0x20] sm:$0xff]   ;;  %v1051_v14 = vld [vmem:[%s1113_s26 + $0x28] sm:$0xff]  }
  0x11   : > { %984 = vmatpush3.bf16.msra.mxu0 %v1038_v1  ;;  %1026 = vmatpush3.bf16.msra.mxu1 %v1038_v1  ;;  %v1048_v11 = vld [vmem:[%s1113_s26 + $0x58] sm:$0xff]   ;;  %v1050_v13 = vld [vmem:[%s1113_s26 + $0x60] sm:$0xff]   ;;  %v1052_v15 = vld [vmem:[%s1113_s26 + $0x68] sm:$0xff]  }
  0x12   : > { %985 = vmatprep.subr.bf16.mxu0 %v1039_v2  ;;  %1023 = vmatprep.subr.bf16.mxu1 %v1039_v2  ;;  %v1053_v16 = vld [vmem:[%s1113_s26 + $0x30] sm:$0xff]   ;;  %v1055_v18 = vld [vmem:[%s1113_s26 + $0x38] sm:$0xff]  }
  0x13   : > { %v1054_v17 = vld [vmem:[%s1113_s26 + $0x70] sm:$0xff]   ;;  %v1056_v19 = vld [vmem:[%s1113_s26 + $0x78] sm:$0xff]  }
  0x15   : > { %986 = vmatpush3.bf16.msra.mxu0 %v1039_v2  ;;  %1027 = vmatpush3.bf16.msra.mxu1 %v1039_v2 }
  0x16   : > { %987 = vmatprep.subr.bf16.mxu0 %v1040_v3  ;;  %1024 = vmatprep.subr.bf16.mxu1 %v1040_v3 }
  0x19   : > { %988 = vmatpush3.bf16.msra.mxu0 %v1040_v3  ;;  %1028 = vmatpush3.bf16.msra.mxu1 %v1040_v3 }
  0x1c   : > { %990 = vmatmul.mubr.msk.bf16.vlgmr.msra.gmra.mxu0 %vm326_vm0, %v1043_v6  ;;  %1006 = vmatmul.mubr.msk.bf16.vlgmr.msra.gmra.mxu1 %vm326_vm0, %v1044_v7 }
  0x1d   : > { %993 = vmatprep.mubr.msk.bf16.mxu0 %vm326_vm0, %v1045_v8  ;;  %1009 = vmatprep.mubr.msk.bf16.mxu1 %vm326_vm0, %v1046_v9 }
  0x24   : > { %994 = vmatmul.mubr.msk.bf16.gmra.mxu0 %vm326_vm0, %v1047_v10  ;;  %1010 = vmatmul.mubr.msk.bf16.gmra.mxu1 %vm326_vm0, %v1048_v11 }
  0x25   : > { %997 = vmatprep.mubr.msk.bf16.mxu0 %vm326_vm0, %v1049_v12  ;;  %1013 = vmatprep.mubr.msk.bf16.mxu1 %vm326_vm0, %v1050_v13 }
  0x2c   : > { %998 = vmatmul.mubr.msk.bf16.gmra.mxu0 %vm326_vm0, %v1051_v14  ;;  %1014 = vmatmul.mubr.msk.bf16.gmra.mxu1 %vm326_vm0, %v1052_v15 }
  0x2d   : > { %1001 = vmatprep.mubr.msk.bf16.mxu0 %vm326_vm0, %v1053_v16  ;;  %1017 = vmatprep.mubr.msk.bf16.mxu1 %vm326_vm0, %v1054_v17 }
  0x34   : > { %1002 = vmatmul.mubr.msk.bf16.gmra.mxu0 %vm326_vm0, %v1055_v18  ;;  %1018 = vmatmul.mubr.msk.bf16.gmra.mxu1 %vm326_vm0, %v1056_v19 }
  0xdc   : > { %v991_v21 = vpop.f32.mrf.mxu0  ;;  %v1007_v22 = vpop.f32.mrf.mxu1 }
  0xdd   : > { %v418_v23 = vadd.f32 %v991_v21, %v1150_v20  ;;  %v482_v24 = vadd.f32 %v1007_v22, %v1150_v20 }
  0xde   : > { %v409_v25 = vpop.f32.mrf.mxu0  ;;  %v473_v26 = vpop.f32.mrf.mxu1 }
  0xdf   : > { %vm538_vm1 = vcmp.gt.f32.partialorder %v418_v23, 0.0  ;;  %v570_v27 = vmul.f32 0.2, %v418_v23  ;;  %vm554_vm2 = vcmp.gt.f32.partialorder %v482_v24, 0.0  ;;  %v586_v28 = vmul.f32 0.2, %v482_v24 }
  0xe0   : > { %v410_v29 = vadd.f32 %v1150_v20, %v409_v25  ;;  %v474_v30 = vadd.f32 %v1150_v20, %v473_v26  ;;  %v992_v31 = vpop.f32.mrf.mxu0  ;;  %v1008_v32 = vpop.f32.mrf.mxu1 }
  0xe1   : > { %v602_v33 = vsel %vm538_vm1, %v418_v23, %v570_v27  ;;  %v618_v34 = vsel %vm554_vm2, %v482_v24, %v586_v28  ;;  %v421_v35 = vadd.f32 %v992_v31, %v1150_v20  ;;  %v485_v36 = vadd.f32 %v1008_v32, %v1150_v20 }
  0xe2   : > { %v931_v37 = vpack.c.bf16 %v602_v33, %v602_v33  ;;  %v947_v38 = vpack.c.bf16 %v618_v34, %v618_v34  ;;  %vm536_vm4 = vcmp.gt.f32.partialorder %v410_v29, 0.0  ;;  %v568_v39 = vmul.f32 0.2, %v410_v29  ;;  %v412_v40 = vpop.f32.mrf.mxu0  ;;  %v476_v41 = vpop.f32.mrf.mxu1 }
  0xe3   : > { %vm552_vm5 = vcmp.gt.f32.partialorder %v474_v30, 0.0  ;;  %v584_v42 = vmul.f32 0.2, %v474_v30  ;;  %vm539_vm6 = vcmp.gt.f32.partialorder %v421_v35, 0.0  ;;  %v571_v43 = vmul.f32 0.2, %v421_v35 }
  0xe4   : > { %763 = vst.msk [vmem:[%s1161_s4 + $0x8] sm:$0xf] %vm760_vm3, %v931_v37  ;;  %779 = vst.msk [vmem:[%s1161_s4 + $0x48] sm:$0xf] %vm760_vm3, %v947_v38  ;;  %v600_v44 = vsel %vm536_vm4, %v410_v29, %v568_v39  ;;  %vm555_vm7 = vcmp.gt.f32.partialorder %v485_v36, 0.0  ;;  %v413_v46 = vadd.f32 %v1150_v20, %v412_v40  ;;  %v995_v47 = vpop.f32.mrf.mxu0  ;;  %v1011_v48 = vpop.f32.mrf.mxu1  ;;  %v477_v52 = vadd.f32 %v1150_v20, %v476_v41 }
  0xe5   : > { %v587_v45 = vmul.f32 0.2, %v485_v36  ;;  %v929_v49 = vpack.c.bf16 %v600_v44, %v600_v44  ;;  %v616_v50 = vsel %vm552_vm5, %v474_v30, %v584_v42  ;;  %v603_v51 = vsel %vm539_vm6, %v421_v35, %v571_v43 }
  0xe6   : > { %v945_v53 = vpack.c.bf16 %v616_v50, %v616_v50  ;;  %v932_v54 = vpack.c.bf16 %v603_v51, %v603_v51  ;;  %vm537_vm8 = vcmp.gt.f32.partialorder %v413_v46, 0.0  ;;  %v425_v56 = vpop.f32.mrf.mxu0  ;;  %v489_v57 = vpop.f32.mrf.mxu1  ;;  %v569_v59 = vmul.f32 0.2, %v413_v46 }
  0xe7   : > { %v619_v55 = vsel %vm555_vm7, %v485_v36, %v587_v45  ;;  %761 = vst.msk [vmem:[%s1161_s4] sm:$0xf] %vm760_vm3, %v929_v49  ;;  %vm553_vm9 = vcmp.gt.f32.partialorder %v477_v52, 0.0  ;;  %v585_v60 = vmul.f32 0.2, %v477_v52  ;;  %v434_v61 = vadd.f32 %v995_v47, %v1150_v20 }
  0xe8   : > { %v948_v58 = vpack.c.bf16 %v619_v55, %v619_v55  ;;  %777 = vst.msk [vmem:[%s1161_s4 + $0x40] sm:$0xf] %vm760_vm3, %v945_v53  ;;  %764 = vst.msk [vmem:[%s1161_s4 + $0xc] sm:$0xf] %vm760_vm3, %v932_v54  ;;  %v498_v62 = vadd.f32 %v1011_v48, %v1150_v20  ;;  %v426_v63 = vadd.f32 %v1150_v20, %v425_v56  ;;  %v996_v1 = vpop.f32.mrf.mxu0  ;;  %v1012_v2 = vpop.f32.mrf.mxu1 }
  0xe9   : > { %v490_v0 = vadd.f32 %v1150_v20, %v489_v57  ;;  %v601_v3 = vsel %vm537_vm8, %v413_v46, %v569_v59  ;;  %v617_v4 = vsel %vm553_vm9, %v477_v52, %v585_v60  ;;  %v437_v5 = vadd.f32 %v996_v1, %v1150_v20 }
  0xea   : > { %780 = vst.msk [vmem:[%s1161_s4 + $0x4c] sm:$0xf] %vm760_vm3, %v948_v58  ;;  %v501_v6 = vadd.f32 %v1012_v2, %v1150_v20  ;;  %v930_v7 = vpack.c.bf16 %v601_v3, %v601_v3  ;;  %v946_v8 = vpack.c.bf16 %v617_v4, %v617_v4  ;;  %vm542_vm10 = vcmp.gt.f32.partialorder %v434_v61, 0.0  ;;  %v428_v10 = vpop.f32.mrf.mxu0  ;;  %v492_v11 = vpop.f32.mrf.mxu1 }
  0xeb   : > { %v574_v9 = vmul.f32 0.2, %v434_v61  ;;  %vm558_vm11 = vcmp.gt.f32.partialorder %v498_v62, 0.0  ;;  %v590_v12 = vmul.f32 0.2, %v498_v62  ;;  %vm540_vm12 = vcmp.gt.f32.partialorder %v426_v63, 0.0 }
  0xec   : > { %v572_v13 = vmul.f32 0.2, %v426_v63  ;;  %762 = vst.msk [vmem:[%s1161_s4 + $0x4] sm:$0xf] %vm760_vm3, %v930_v7  ;;  %778 = vst.msk [vmem:[%s1161_s4 + $0x44] sm:$0xf] %vm760_vm3, %v946_v8  ;;  %v999_v16 = vpop.f32.mrf.mxu0  ;;  %v1015_v17 = vpop.f32.mrf.mxu1  ;;  %v429_v31 = vadd.f32 %v1150_v20, %v428_v10  ;;  %v493_v33 = vadd.f32 %v1150_v20, %v492_v11 }
  0xed   : > { %v606_v14 = vsel %vm542_vm10, %v434_v61, %v574_v9  ;;  %vm556_vm13 = vcmp.gt.f32.partialorder %v490_v0, 0.0  ;;  %v588_v15 = vmul.f32 0.2, %v490_v0  ;;  %vm543_vm14 = vcmp.gt.f32.partialorder %v437_v5, 0.0 }
  0xee   : > { %v935_v18 = vpack.c.bf16 %v606_v14, %v606_v14  ;;  %v622_v19 = vsel %vm558_vm11, %v498_v62, %v590_v12  ;;  %v604_v21 = vsel %vm540_vm12, %v426_v63, %v572_v13  ;;  %v575_v22 = vmul.f32 0.2, %v437_v5  ;;  %v441_v26 = vpop.f32.mrf.mxu0  ;;  %v505_v27 = vpop.f32.mrf.mxu1 }
  0xef   : > { %v951_v23 = vpack.c.bf16 %v622_v19, %v622_v19  ;;  %v933_v24 = vpack.c.bf16 %v604_v21, %v604_v21  ;;  %v620_v25 = vsel %vm556_vm13, %v490_v0, %v588_v15  ;;  %vm559_vm15 = vcmp.gt.f32.partialorder %v501_v6, 0.0 }
  0xf0   : > { %767 = vst.msk [vmem:[%s1161_s4 + $0x18] sm:$0xf] %vm760_vm3, %v935_v18  ;;  %v949_v28 = vpack.c.bf16 %v620_v25, %v620_v25  ;;  %v607_v29 = vsel %vm543_vm14, %v437_v5, %v575_v22  ;;  %v591_v30 = vmul.f32 0.2, %v501_v6  ;;  %v450_v34 = vadd.f32 %v999_v16, %v1150_v20  ;;  %v1000_v36 = vpop.f32.mrf.mxu0  ;;  %v1016_v37 = vpop.f32.mrf.mxu1 }
  0xf1   : > { %783 = vst.msk [vmem:[%s1161_s4 + $0x58] sm:$0xf] %vm760_vm3, %v951_v23  ;;  %765 = vst.msk [vmem:[%s1161_s4 + $0x10] sm:$0xf] %vm760_vm3, %v933_v24  ;;  %v936_v32 = vpack.c.bf16 %v607_v29, %v607_v29  ;;  %v514_v35 = vadd.f32 %v1015_v17, %v1150_v20  ;;  %vm541_vm0 = vcmp.gt.f32.partialorder %v429_v31, 0.0  ;;  %v442_v40 = vadd.f32 %v1150_v20, %v441_v26 }
  0xf2   : > { %781 = vst.msk [vmem:[%s1161_s4 + $0x50] sm:$0xf] %vm760_vm3, %v949_v28  ;;  %v623_v38 = vsel %vm559_vm15, %v501_v6, %v591_v30  ;;  %v573_v39 = vmul.f32 0.2, %v429_v31  ;;  %vm557_vm1 = vcmp.gt.f32.partialorder %v493_v33, 0.0  ;;  %vm546_vm2 = vcmp.gt.f32.partialorder %v450_v34, 0.0  ;;  %v444_v43 = vpop.f32.mrf.mxu0  ;;  %v508_v44 = vpop.f32.mrf.mxu1 }
  0xf3   : > { %768 = vst.msk [vmem:[%s1161_s4 + $0x1c] sm:$0xf] %vm760_vm3, %v936_v32  ;;  %v952_v41 = vpack.c.bf16 %v623_v38, %v623_v38  ;;  %v589_v42 = vmul.f32 0.2, %v493_v33  ;;  %v578_v46 = vmul.f32 0.2, %v450_v34  ;;  %v506_v56 = vadd.f32 %v1150_v20, %v505_v27 }
  0xf4   : > { %v605_v45 = vsel %vm541_vm0, %v429_v31, %v573_v39  ;;  %vm562_vm4 = vcmp.gt.f32.partialorder %v514_v35, 0.0  ;;  %v594_v47 = vmul.f32 0.2, %v514_v35  ;;  %vm544_vm5 = vcmp.gt.f32.partialorder %v442_v40, 0.0  ;;  %v1003_v51 = vpop.f32.mrf.mxu0  ;;  %v1019_v52 = vpop.f32.mrf.mxu1 }
  0xf5   : > { %784 = vst.msk [vmem:[%s1161_s4 + $0x5c] sm:$0xf] %vm760_vm3, %v952_v41  ;;  %v934_v48 = vpack.c.bf16 %v605_v45, %v605_v45  ;;  %v621_v49 = vsel %vm557_vm1, %v493_v33, %v589_v42  ;;  %v576_v50 = vmul.f32 0.2, %v442_v40  ;;  %v610_v54 = vsel %vm546_vm2, %v450_v34, %v578_v46 }
  0xf6   : > { %v950_v53 = vpack.c.bf16 %v621_v49, %v621_v49  ;;  %v626_v55 = vsel %vm562_vm4, %v514_v35, %v594_v47  ;;  %v939_v57 = vpack.c.bf16 %v610_v54, %v610_v54  ;;  %v453_v60 = vadd.f32 %v1000_v36, %v1150_v20  ;;  %v457_v61 = vpop.f32.mrf.mxu0  ;;  %v521_v1 = vpop.f32.mrf.mxu1 }
  0xf7   : > { %766 = vst.msk [vmem:[%s1161_s4 + $0x14] sm:$0xf] %vm760_vm3, %v934_v48  ;;  %v955_v58 = vpack.c.bf16 %v626_v55, %v626_v55  ;;  %v608_v59 = vsel %vm544_vm5, %v442_v40, %v576_v50  ;;  %vm560_vm6 = vcmp.gt.f32.partialorder %v506_v56, 0.0  ;;  %v592_v63 = vmul.f32 0.2, %v506_v56 }
  0xf8   : > { %782 = vst.msk [vmem:[%s1161_s4 + $0x54] sm:$0xf] %vm760_vm3, %v950_v53  ;;  %v937_v62 = vpack.c.bf16 %v608_v59, %v608_v59  ;;  %v517_v0 = vadd.f32 %v1016_v37, %v1150_v20  ;;  %771 = vst.msk [vmem:[%s1161_s4 + $0x28] sm:$0xf] %vm760_vm3, %v939_v57  ;;  %vm547_vm7 = vcmp.gt.f32.partialorder %v453_v60, 0.0  ;;  %v445_v3 = vadd.f32 %v1150_v20, %v444_v43  ;;  %v1004_v11 = vpop.f32.mrf.mxu0  ;;  %v1020_v15 = vpop.f32.mrf.mxu1 }
  0xf9   : > { %787 = vst.msk [vmem:[%s1161_s4 + $0x68] sm:$0xf] %vm760_vm3, %v955_v58  ;;  %v579_v2 = vmul.f32 0.2, %v453_v60  ;;  %v509_v4 = vadd.f32 %v1150_v20, %v508_v44  ;;  %v624_v5 = vsel %vm560_vm6, %v506_v56, %v592_v63  ;;  %v466_v7 = vadd.f32 %v1003_v51, %v1150_v20 }
  0xfa   : > { %769 = vst.msk [vmem:[%s1161_s4 + $0x20] sm:$0xf] %vm760_vm3, %v937_v62  ;;  %vm563_vm8 = vcmp.gt.f32.partialorder %v517_v0, 0.0  ;;  %v595_v6 = vmul.f32 0.2, %v517_v0  ;;  %v953_v8 = vpack.c.bf16 %v624_v5, %v624_v5  ;;  %vm545_vm9 = vcmp.gt.f32.partialorder %v445_v3, 0.0  ;;  %v460_v28 = vpop.f32.mrf.mxu0  ;;  %v524_v31 = vpop.f32.mrf.mxu1 }
  0xfb   : > { %v611_v9 = vsel %vm547_vm7, %v453_v60, %v579_v2  ;;  %v577_v10 = vmul.f32 0.2, %v445_v3  ;;  %vm561_vm10 = vcmp.gt.f32.partialorder %v509_v4, 0.0  ;;  %v593_v14 = vmul.f32 0.2, %v509_v4 }
  0xfc   : > { %v940_v12 = vpack.c.bf16 %v611_v9, %v611_v9  ;;  %v627_v13 = vsel %vm563_vm8, %v517_v0, %v595_v6  ;;  %785 = vst.msk [vmem:[%s1161_s4 + $0x60] sm:$0xf] %vm760_vm3, %v953_v8  ;;  %vm550_vm11 = vcmp.gt.f32.partialorder %v466_v7, 0.0  ;;  %v582_v18 = vmul.f32 0.2, %v466_v7 }
  0xfd   : > { %v956_v16 = vpack.c.bf16 %v627_v13, %v627_v13  ;;  %v609_v17 = vsel %vm545_vm9, %v445_v3, %v577_v10  ;;  %v625_v21 = vsel %vm561_vm10, %v509_v4, %v593_v14  ;;  %v530_v22 = vadd.f32 %v1019_v52, %v1150_v20 }
  0xfe   : > { %772 = vst.msk [vmem:[%s1161_s4 + $0x2c] sm:$0xf] %vm760_vm3, %v940_v12  ;;  %v938_v19 = vpack.c.bf16 %v609_v17, %v609_v17  ;;  %v458_v23 = vadd.f32 %v1150_v20, %v457_v61  ;;  %v954_v24 = vpack.c.bf16 %v625_v21, %v625_v21  ;;  %v614_v25 = vsel %vm550_vm11, %v466_v7, %v582_v18 }
  0xff   : > { %788 = vst.msk [vmem:[%s1161_s4 + $0x6c] sm:$0xf] %vm760_vm3, %v956_v16  ;;  %v522_v26 = vadd.f32 %v1150_v20, %v521_v1  ;;  %v469_v27 = vadd.f32 %v1004_v11, %v1150_v20  ;;  %v943_v29 = vpack.c.bf16 %v614_v25, %v614_v25  ;;  %vm566_vm12 = vcmp.gt.f32.partialorder %v530_v22, 0.0 }
 0x100   : > { %770 = vst.msk [vmem:[%s1161_s4 + $0x24] sm:$0xf] %vm760_vm3, %v938_v19  ;;  %v598_v30 = vmul.f32 0.2, %v530_v22  ;;  %vm548_vm13 = vcmp.gt.f32.partialorder %v458_v23, 0.0  ;;  %v533_v36 = vadd.f32 %v1020_v15, %v1150_v20  ;;  %v461_v37 = vadd.f32 %v1150_v20, %v460_v28 }
 0x101   : > { %786 = vst.msk [vmem:[%s1161_s4 + $0x64] sm:$0xf] %vm760_vm3, %v954_v24  ;;  %v580_v32 = vmul.f32 0.2, %v458_v23  ;;  %vm564_vm14 = vcmp.gt.f32.partialorder %v522_v26, 0.0  ;;  %vm551_vm15 = vcmp.gt.f32.partialorder %v469_v27, 0.0  ;;  %v525_v41 = vadd.f32 %v1150_v20, %v524_v31 }
 0x102   : > { %v596_v33 = vmul.f32 0.2, %v522_v26  ;;  %775 = vst.msk [vmem:[%s1161_s4 + $0x38] sm:$0xf] %vm760_vm3, %v943_v29  ;;  %v630_v34 = vsel %vm566_vm12, %v530_v22, %v598_v30  ;;  %v583_v35 = vmul.f32 0.2, %v469_v27 }
 0x103   : > { %v959_v38 = vpack.c.bf16 %v630_v34, %v630_v34  ;;  %v612_v39 = vsel %vm548_vm13, %v458_v23, %v580_v32  ;;  %vm567_vm0 = vcmp.gt.f32.partialorder %v533_v36, 0.0  ;;  %v599_v46 = vmul.f32 0.2, %v533_v36 }
 0x104   : > { %v628_v40 = vsel %vm564_vm14, %v522_v26, %v596_v33  ;;  %v941_v42 = vpack.c.bf16 %v612_v39, %v612_v39  ;;  %v615_v44 = vsel %vm551_vm15, %v469_v27, %v583_v35  ;;  %vm549_vm1 = vcmp.gt.f32.partialorder %v461_v37, 0.0 }
 0x105   : > { %v957_v43 = vpack.c.bf16 %v628_v40, %v628_v40  ;;  %791 = vst.msk [vmem:[%s1161_s4 + $0x78] sm:$0xf] %vm760_vm3, %v959_v38  ;;  %v944_v45 = vpack.c.bf16 %v615_v44, %v615_v44  ;;  %v581_v47 = vmul.f32 0.2, %v461_v37  ;;  %vm565_vm2 = vcmp.gt.f32.partialorder %v525_v41, 0.0 }
 0x106   : > { %773 = vst.msk [vmem:[%s1161_s4 + $0x30] sm:$0xf] %vm760_vm3, %v941_v42  ;;  %v597_v48 = vmul.f32 0.2, %v525_v41  ;;  %v631_v20 = vsel %vm567_vm0, %v533_v36, %v599_v46 }
 0x107   : > { %789 = vst.msk [vmem:[%s1161_s4 + $0x70] sm:$0xf] %vm760_vm3, %v957_v43  ;;  %776 = vst.msk [vmem:[%s1161_s4 + $0x3c] sm:$0xf] %vm760_vm3, %v944_v45  ;;  %v613_v49 = vsel %vm549_vm1, %v461_v37, %v581_v47  ;;  %v960_v50 = vpack.c.bf16 %v631_v20, %v631_v20 }
 0x108   : > { %v942_v51 = vpack.c.bf16 %v613_v49, %v613_v49  ;;  %v629_v52 = vsel %vm565_vm2, %v525_v41, %v597_v48 }
 0x109   : > { %v958_v53 = vpack.c.bf16 %v629_v52, %v629_v52  ;;  %792 = vst.msk [vmem:[%s1161_s4 + $0x7c] sm:$0xf] %vm760_vm3, %v960_v50 }
 0x10a   : > { %774 = vst.msk [vmem:[%s1161_s4 + $0x34] sm:$0xf] %vm760_vm3, %v942_v51 }
 0x10b   : > { %790 = vst.msk [vmem:[%s1161_s4 + $0x74] sm:$0xf] %vm760_vm3, %v958_v53 }
 0x10c PF: > { %s13_s12 = sadd.s32 1, %s1063_s12  }
 0x10d   : > { %p10_p4 = scmp.ge.s32.totalorder %s13_s12, 4  }
 0x10f   :  { %12 = sbr.rel (!%p10_p4) target bundleno = 1 (0x1), region = 62 }

// kernel: _lambda_.6
= control target key start
LH: loop header
LB: loop body
LE: loop exit
PB: predicated region body
PF: predicated region fallthrough
CT: control target
= control target key end

     0   :  { %vm303_vm0 = vcmask 125952   ;;  %vm320_vm1 = vcmask 130048   ;;  %vm411_vm2 = vcmask 1040384   ;;  %vm413_vm3 = vcmask 123904   ;;  %s767_s1 = inlined_call_operand.vmem [shape: bf16[128,16], index: 1, kind: input, shape index: {}]   ;;  %s768_s0 = inlined_call_operand.vmem [shape: bf16[128,128], index: 0, kind: input, shape index: {}]   ;;  %s769_s2 = inlined_call_operand.vmem [shape: bf16[128,16], index: 2, kind: output, shape index: {0}]   ;;  %s770_s3 = inlined_call_operand.vmem [shape: f32[1,2,16], index: 3, kind: output, shape index: {1}]  }
   0x1   :  { %v535_v0 = vld [vmem:[%s767_s1 + $0x38] sm:$0xff]   ;;  %v536_v1 = vld [vmem:[%s767_s1 + $0x30] sm:$0xff]   ;;  %v537_v2 = vld [vmem:[%s767_s1 + $0x28] sm:$0xff]  }
   0x2   :  { %487 = vmatprep.subr.bf16.mxu0 %v535_v0  ;;  %519 = vmatprep.subr.bf16.mxu1 %v535_v0  ;;  %v538_v3 = vld [vmem:[%s767_s1 + $0x20] sm:$0xff]   ;;  %v539_v5 = vld [vmem:[%s767_s1 + $0x18] sm:$0xff]   ;;  %v540_v7 = vld [vmem:[%s767_s1 + $0x10] sm:$0xff]  }
   0x3   :  { %488 = vmatpush3.bf16.msra.mxu0 %v535_v0  ;;  %527 = vmatpush3.bf16.msra.mxu1 %v535_v0  ;;  %v543_v4 = vld [vmem:[%s768_s0] sm:$0xff]   ;;  %v541_v8 = vld [vmem:[%s767_s1 + $0x8] sm:$0xff]   ;;  %v545_v12 = vld [vmem:[%s768_s0 + $0x10] sm:$0xff]  }
   0x4   :  { %489 = vmatprep.subr.bf16.mxu0 %v536_v1  ;;  %520 = vmatprep.subr.bf16.mxu1 %v536_v1  ;;  %v547_v6 = vld [vmem:[%s768_s0 + $0x20] sm:$0xff]   ;;  %v544_v10 = vld [vmem:[%s768_s0 + $0x8] sm:$0xff]   ;;  %v549_v13 = vld [vmem:[%s768_s0 + $0x30] sm:$0xff]  }
   0x5   :  { %503 = vmatprep.mubr.bf16.mxu0 %v543_v4  ;;  %511 = vmatprep.mubr.bf16.mxu1 %v547_v6  ;;  %v542_v9 = vld [vmem:[%s767_s1] sm:$0xff]   ;;  %v548_v11 = vld [vmem:[%s768_s0 + $0x28] sm:$0xff]   ;;  %v546_v14 = vld [vmem:[%s768_s0 + $0x18] sm:$0xff]  }
   0x6   :  { %v550_v15 = vld [vmem:[%s768_s0 + $0x38] sm:$0xff]  }
   0x7   :  { %490 = vmatpush3.bf16.msra.mxu0 %v536_v1  ;;  %528 = vmatpush3.bf16.msra.mxu1 %v536_v1 }
   0x8   :  { %491 = vmatprep.subr.bf16.mxu0 %v537_v2  ;;  %521 = vmatprep.subr.bf16.mxu1 %v537_v2 }
   0xb   :  { %492 = vmatpush3.bf16.msra.mxu0 %v537_v2  ;;  %529 = vmatpush3.bf16.msra.mxu1 %v537_v2 }
   0xc   :  { %493 = vmatprep.subr.bf16.mxu0 %v538_v3  ;;  %522 = vmatprep.subr.bf16.mxu1 %v538_v3 }
   0xf   :  { %494 = vmatpush3.bf16.msra.mxu0 %v538_v3  ;;  %530 = vmatpush3.bf16.msra.mxu1 %v538_v3 }
  0x10   :  { %495 = vmatprep.subr.bf16.mxu0 %v539_v5  ;;  %523 = vmatprep.subr.bf16.mxu1 %v539_v5 }
  0x13   :  { %496 = vmatpush3.bf16.msra.mxu0 %v539_v5  ;;  %531 = vmatpush3.bf16.msra.mxu1 %v539_v5 }
  0x14   :  { %497 = vmatprep.subr.bf16.mxu0 %v540_v7  ;;  %524 = vmatprep.subr.bf16.mxu1 %v540_v7 }
  0x17   :  { %498 = vmatpush3.bf16.msra.mxu0 %v540_v7  ;;  %532 = vmatpush3.bf16.msra.mxu1 %v540_v7 }
  0x18   :  { %499 = vmatprep.subr.bf16.mxu0 %v541_v8  ;;  %525 = vmatprep.subr.bf16.mxu1 %v541_v8 }
  0x1b   :  { %500 = vmatpush3.bf16.msra.mxu0 %v541_v8  ;;  %533 = vmatpush3.bf16.msra.mxu1 %v541_v8 }
  0x1c   :  { %501 = vmatprep.subr.bf16.mxu0 %v542_v9  ;;  %526 = vmatprep.subr.bf16.mxu1 %v542_v9 }
  0x1f   :  { %502 = vmatpush3.bf16.msra.mxu0 %v542_v9  ;;  %534 = vmatpush3.bf16.msra.mxu1 %v542_v9 }
  0x22   :  { %504 = vmatmul.mubr.bf16.vlgmr.msra.gmra.mxu0 %v544_v10  ;;  %512 = vmatmul.mubr.bf16.vlgmr.msra.gmra.mxu1 %v548_v11 }
  0x23   :  { %507 = vmatprep.mubr.bf16.mxu0 %v545_v12  ;;  %515 = vmatprep.mubr.bf16.mxu1 %v549_v13 }
  0x2a   :  { %508 = vmatmul.mubr.bf16.gmra.mxu0 %v546_v14  ;;  %516 = vmatmul.mubr.bf16.gmra.mxu1 %v550_v15 }
  0xe2   :  { %v505_v16 = vpop.f32.mrf.mxu0  ;;  %v619_v17 = vpop.f32.mrf.mxu1 }
  0xe3   :  { %v457_v18 = vpack.c.bf16 %v505_v16, %v505_v16  ;;  %v465_v19 = vpack.c.bf16 %v619_v17, %v619_v17  ;;  %v360_v28 = vmul.f32 %v505_v16, %v505_v16  ;;  %v324_v36 = vsel %vm320_vm1, %v505_v16, 0.0 }
  0xe4   :  { %v176_v20 = vpop.f32.mrf.mxu0  ;;  %v623_v21 = vpop.f32.mrf.mxu1 }
  0xe5   :  { %306 = vst.msk [vmem:[%s769_s2 + $0x8] sm:$0xf] %vm303_vm0, %v457_v18  ;;  %v455_v22 = vpack.c.bf16 %v176_v20, %v176_v20  ;;  %314 = vst.msk [vmem:[%s769_s2 + $0x28] sm:$0xf] %vm303_vm0, %v465_v19  ;;  %v463_v24 = vpack.c.bf16 %v623_v21, %v623_v21  ;;  %v358_v26 = vmul.f32 %v176_v20, %v176_v20  ;;  %v321_v32 = vsel %vm320_vm1, %v176_v20, 0.0 }
  0xe6   :  { %v506_v23 = vpop.f32.mrf.mxu0  ;;  %v635_v25 = vpop.f32.mrf.mxu1  ;;  %v377_v50 = vsel %vm320_vm1, %v360_v28, 0.0  ;;  %v366_v19 = vmul.f32 %v623_v21, %v623_v21 }
  0xe7   :  { %304 = vst.msk [vmem:[%s769_s2] sm:$0xf] %vm303_vm0, %v455_v22  ;;  %v458_v27 = vpack.c.bf16 %v506_v23, %v506_v23  ;;  %312 = vst.msk [vmem:[%s769_s2 + $0x20] sm:$0xf] %vm303_vm0, %v463_v24  ;;  %v466_v30 = vpack.c.bf16 %v635_v25, %v635_v25  ;;  %v374_v41 = vsel %vm320_vm1, %v358_v26, 0.0  ;;  %v361_v42 = vmul.f32 %v506_v23, %v506_v23 }
  0xe8   :  { %v179_v29 = vpop.f32.mrf.mxu0  ;;  %v647_v31 = vpop.f32.mrf.mxu1  ;;  %v326_v51 = vsel %vm320_vm1, %v506_v23, 0.0  ;;  %v336_v24 = vsel %vm320_vm1, %v623_v21, 0.0  ;;  %v369_v21 = vmul.f32 %v635_v25, %v635_v25 }
  0xe9   :  { %307 = vst.msk [vmem:[%s769_s2 + $0xc] sm:$0xf] %vm303_vm0, %v458_v27  ;;  %v456_v33 = vpack.c.bf16 %v179_v29, %v179_v29  ;;  %v322_v34 = vsel %vm320_vm1, %v179_v29, 0.0  ;;  %v359_v35 = vmul.f32 %v179_v29, %v179_v29  ;;  %315 = vst.msk [vmem:[%s769_s2 + $0x2c] sm:$0xf] %vm303_vm0, %v466_v30  ;;  %v464_v39 = vpack.c.bf16 %v647_v31, %v647_v31 }
  0xea   :  { %v323_v37 = vadd.f32 %v322_v34, %v321_v32  ;;  %v509_v38 = vpop.f32.mrf.mxu0  ;;  %v662_v40 = vpop.f32.mrf.mxu1  ;;  %v379_v58 = vsel %vm320_vm1, %v361_v42, 0.0  ;;  %v367_v26 = vmul.f32 %v647_v31, %v647_v31  ;;  %v368_v29 = vmul.f32 %v619_v17, %v619_v17 }
  0xeb   :  { %305 = vst.msk [vmem:[%s769_s2 + $0x4] sm:$0xf] %vm303_vm0, %v456_v33  ;;  %v375_v43 = vsel %vm320_vm1, %v359_v35, 0.0  ;;  %v461_v44 = vpack.c.bf16 %v509_v38, %v509_v38  ;;  %313 = vst.msk [vmem:[%s769_s2 + $0x24] sm:$0xf] %vm303_vm0, %v464_v39  ;;  %v469_v48 = vpack.c.bf16 %v662_v40, %v662_v40  ;;  %v364_v61 = vmul.f32 %v509_v38, %v509_v38 }
  0xec   :  { %v325_v45 = vadd.f32 %v324_v36, %v323_v37  ;;  %v376_v46 = vadd.f32 %v375_v43, %v374_v41  ;;  %v192_v47 = vpop.f32.mrf.mxu0  ;;  %v676_v49 = vpop.f32.mrf.mxu1  ;;  %v332_v9 = vsel %vm320_vm1, %v509_v38, 0.0  ;;  %v389_v30 = vsel %vm320_vm1, %v366_v19, 0.0 }
  0xed   :  { %310 = vst.msk [vmem:[%s769_s2 + $0x18] sm:$0xf] %vm303_vm0, %v461_v44  ;;  %v459_v52 = vpack.c.bf16 %v192_v47, %v192_v47  ;;  %v362_v53 = vmul.f32 %v192_v47, %v192_v47  ;;  %318 = vst.msk [vmem:[%s769_s2 + $0x38] sm:$0xf] %vm303_vm0, %v469_v48  ;;  %v328_v59 = vsel %vm320_vm1, %v192_v47, 0.0  ;;  %v467_v1 = vpack.c.bf16 %v676_v49, %v676_v49 }
  0xee   :  { %v378_v54 = vadd.f32 %v377_v50, %v376_v46  ;;  %v327_v55 = vadd.f32 %v326_v51, %v325_v45  ;;  %v510_v56 = vpop.f32.mrf.mxu0  ;;  %v688_v57 = vpop.f32.mrf.mxu1  ;;  %v385_v16 = vsel %vm320_vm1, %v364_v61, 0.0  ;;  %v338_v32 = vsel %vm320_vm1, %v647_v31, 0.0 }
  0xef   :  { %308 = vst.msk [vmem:[%s769_s2 + $0x10] sm:$0xf] %vm303_vm0, %v459_v52  ;;  %v462_v60 = vpack.c.bf16 %v510_v56, %v510_v56  ;;  %v381_v2 = vsel %vm320_vm1, %v362_v53, 0.0  ;;  %316 = vst.msk [vmem:[%s769_s2 + $0x30] sm:$0xf] %vm303_vm0, %v467_v1  ;;  %v365_v10 = vmul.f32 %v510_v56, %v510_v56  ;;  %v470_v12 = vpack.c.bf16 %v688_v57, %v688_v57 }
  0xf0   :  { %v329_v62 = vadd.f32 %v328_v59, %v327_v55  ;;  %v380_v63 = vadd.f32 %v379_v58, %v378_v54  ;;  %v195_v0 = vpop.f32.mrf.mxu0  ;;  %v227_v6 = vpop.f32.mrf.mxu1  ;;  %v334_v18 = vsel %vm320_vm1, %v510_v56, 0.0  ;;  %v340_v35 = vsel %vm320_vm1, %v619_v17, 0.0 }
  0xf1   :  { %311 = vst.msk [vmem:[%s769_s2 + $0x1c] sm:$0xf] %vm303_vm0, %v462_v60  ;;  %v460_v3 = vpack.c.bf16 %v195_v0, %v195_v0  ;;  %v330_v4 = vsel %vm320_vm1, %v195_v0, 0.0  ;;  %v363_v5 = vmul.f32 %v195_v0, %v195_v0  ;;  %v468_v15 = vpack.c.bf16 %v227_v6, %v227_v6  ;;  %319 = vst.msk [vmem:[%s769_s2 + $0x3c] sm:$0xf] %vm303_vm0, %v470_v12 }
  0xf2   :  { %v382_v7 = vadd.f32 %v381_v2, %v380_v63  ;;  %v331_v8 = vadd.f32 %v330_v4, %v329_v62  ;;  %v387_v23 = vsel %vm320_vm1, %v365_v10, 0.0  ;;  %v391_v36 = vsel %vm320_vm1, %v367_v26, 0.0 }
  0xf3   :  { %309 = vst.msk [vmem:[%s769_s2 + $0x14] sm:$0xf] %vm303_vm0, %v460_v3  ;;  %v383_v11 = vsel %vm320_vm1, %v363_v5, 0.0  ;;  %317 = vst.msk [vmem:[%s769_s2 + $0x34] sm:$0xf] %vm303_vm0, %v468_v15  ;;  %v393_v39 = vsel %vm320_vm1, %v368_v29, 0.0  ;;  %v370_v31 = vmul.f32 %v676_v49, %v676_v49  ;;  %v371_v45 = vmul.f32 %v227_v6, %v227_v6 }
  0xf4   :  { %v333_v13 = vadd.f32 %v332_v9, %v331_v8  ;;  %v384_v14 = vadd.f32 %v383_v11, %v382_v7  ;;  %v342_v41 = vsel %vm320_vm1, %v635_v25, 0.0  ;;  %v395_v44 = vsel %vm320_vm1, %v369_v21, 0.0 }
  0xf5   :  { %v344_v17 = vsel %vm320_vm1, %v676_v49, 0.0  ;;  %v372_v48 = vmul.f32 %v662_v40, %v662_v40  ;;  %v397_v50 = vsel %vm320_vm1, %v370_v31, 0.0  ;;  %v346_v25 = vsel %vm320_vm1, %v227_v6, 0.0 }
  0xf6   :  { %v335_v20 = vadd.f32 %v334_v18, %v333_v13  ;;  %v386_v22 = vadd.f32 %v385_v16, %v384_v14  ;;  %v348_v53 = vsel %vm320_vm1, %v662_v40, 0.0  ;;  %v373_v54 = vmul.f32 %v688_v57, %v688_v57 }
  0xf7   :  { %v399_v49 = vsel %vm320_vm1, %v371_v45, 0.0  ;;  %v401_v58 = vsel %vm320_vm1, %v372_v48, 0.0  ;;  %v350_v59 = vsel %vm320_vm1, %v688_v57, 0.0 }
  0xf8   :  { %v388_v27 = vadd.f32 %v387_v23, %v386_v22  ;;  %v337_v28 = vadd.f32 %v336_v24, %v335_v20  ;;  %v403_v62 = vsel %vm320_vm1, %v373_v54, 0.0 }
  0xfa   :  { %v339_v33 = vadd.f32 %v338_v32, %v337_v28  ;;  %v390_v34 = vadd.f32 %v389_v30, %v388_v27 }
  0xfc   :  { %v341_v37 = vadd.f32 %v340_v35, %v339_v33  ;;  %v392_v38 = vadd.f32 %v391_v36, %v390_v34 }
  0xfe   :  { %v394_v42 = vadd.f32 %v393_v39, %v392_v38  ;;  %v343_v43 = vadd.f32 %v342_v41, %v341_v37 }
 0x100   :  { %v345_v46 = vadd.f32 %v344_v17, %v343_v43  ;;  %v396_v47 = vadd.f32 %v395_v44, %v394_v42 }
 0x102   :  { %v398_v51 = vadd.f32 %v397_v50, %v396_v47  ;;  %v347_v52 = vadd.f32 %v346_v25, %v345_v46 }
 0x104   :  { %v349_v55 = vadd.f32 %v348_v53, %v347_v52  ;;  %v400_v56 = vadd.f32 %v399_v49, %v398_v51 }
 0x106   :  { %v351_v60 = vadd.f32 %v350_v59, %v349_v55  ;;  %v402_v61 = vadd.f32 %v401_v58, %v400_v56 }
 0x108   :  { %v352_v63 = vrot.slane %v351_v60, 4  ;;  %v404_v0 = vadd.f32 %v403_v62, %v402_v61 }
 0x10a   :  { %v353_v1 = vadd.f32 %v352_v63, %v351_v60  ;;  %v405_v40 = vrot.slane %v404_v0, 4 }
 0x10c   :  { %v354_v2 = vrot.slane %v353_v1, 2  ;;  %v406_v3 = vadd.f32 %v405_v40, %v404_v0 }
 0x10e   :  { %v355_v4 = vadd.f32 %v354_v2, %v353_v1  ;;  %v407_v5 = vrot.slane %v406_v3, 2 }
 0x110   :  { %v356_v6 = vrot.slane %v355_v4, 1  ;;  %v408_v7 = vadd.f32 %v407_v5, %v406_v3 }
 0x112   :  { %v409_v8 = vrot.slane %v408_v7, 1  ;;  %v357_v9 = vadd.f32 %v356_v6, %v355_v4 }
 0x114   :  { %v410_v10 = vadd.f32 %v409_v8, %v408_v7 }
 0x116   :  { %v412_v57 = vsel %vm411_vm2, %v357_v9, %v410_v10 }
 0x117   :  { %414 = vst.msk [vmem:[%s770_s3] sm:$0x3] %vm413_vm3, %v412_v57 }

// kernel: _lambda_.7
= control target key start
LH: loop header
LB: loop body
LE: loop exit
PB: predicated region body
PF: predicated region fallthrough
CT: control target
= control target key end

     0   :  { %vm247_vm8 = vcmask 257024   ;;  %vm252_vm9 = vcmask 261120   ;;  %vm283_vm10 = vcmask 1040384   ;;  %vm285_vm11 = vcmask 254976   ;;  %s486_s1 = inlined_call_operand.vmem [shape: bf16[256,32], index: 1, kind: input, shape index: {}]   ;;  %s487_s0 = inlined_call_operand.vmem [shape: bf16[32,256], index: 0, kind: input, shape index: {}]   ;;  %s488_s2 = inlined_call_operand.vmem [shape: bf16[32,32], index: 2, kind: output, shape index: {0}]   ;;  %s489_s3 = inlined_call_operand.vmem [shape: f32[1,2,32], index: 3, kind: output, shape index: {1}]  }
   0x1   :  { %v363_v0 = vld [vmem:[%s486_s1 + $0x78] sm:$0xff]   ;;  %v365_v2 = vld [vmem:[%s486_s1 + $0x70] sm:$0xff]   ;;  %v367_v4 = vld [vmem:[%s486_s1 + $0x68] sm:$0xff]  }
   0x2   :  { %v364_v1 = vld [vmem:[%s486_s1 + $0x38] sm:$0xff]   ;;  %319 = vmatprep.subr.bf16.mxu0 %v363_v0  ;;  %347 = vmatprep.subr.bf16.mxu1 %v363_v0  ;;  %v366_v3 = vld [vmem:[%s486_s1 + $0x30] sm:$0xff]   ;;  %v368_v5 = vld [vmem:[%s486_s1 + $0x28] sm:$0xff]  }
   0x3   :  { %320 = vmatpush3.bf16.msra.mxu0 %v364_v1  ;;  %355 = vmatpush3.bf16.msra.mxu1 %v364_v1  ;;  %v369_v6 = vld [vmem:[%s486_s1 + $0x60] sm:$0xff]   ;;  %v371_v8 = vld [vmem:[%s486_s1 + $0x58] sm:$0xff]   ;;  %v373_v10 = vld [vmem:[%s486_s1 + $0x50] sm:$0xff]  }
   0x4   :  { %321 = vmatprep.subr.bf16.mxu0 %v365_v2  ;;  %348 = vmatprep.subr.bf16.mxu1 %v365_v2  ;;  %v370_v7 = vld [vmem:[%s486_s1 + $0x20] sm:$0xff]   ;;  %v372_v9 = vld [vmem:[%s486_s1 + $0x18] sm:$0xff]   ;;  %v15_v12 = vld [vmem:[%s487_s0 + $0x8] sm:$0xff] }
   0x5   :  { %v14_v11 = vld [vmem:[%s487_s0] sm:$0xff]  ;;  %v16_v13 = vld [vmem:[%s487_s0 + $0x10] sm:$0xff]  ;;  %v20_v16 = vunpack.c.l.bf16 %v15_v12  ;;  %v21_v17 = vunpack.c.h.bf16 %v15_v12  ;;  %v17_v18 = vld [vmem:[%s487_s0 + $0x18] sm:$0xff] }
   0x6   :  { %v18_v14 = vunpack.c.l.bf16 %v14_v11  ;;  %v19_v15 = vunpack.c.h.bf16 %v14_v11  ;;  %v374_v19 = vld [vmem:[%s486_s1 + $0x10] sm:$0xff]   ;;  %v375_v20 = vld [vmem:[%s486_s1 + $0x48] sm:$0xff]   ;;  %v22_v21 = vunpack.c.l.bf16 %v16_v13  ;;  %v23_v22 = vunpack.c.h.bf16 %v16_v13  ;;  %v377_v36 = vld [vmem:[%s486_s1 + $0x40] sm:$0xff]  }
   0x7   :  { %322 = vmatpush3.bf16.msra.mxu0 %v366_v3  ;;  %356 = vmatpush3.bf16.msra.mxu1 %v366_v3  ;;  %v24_v23 = vunpack.c.l.bf16 %v17_v18  ;;  %v25_v24 = vunpack.c.h.bf16 %v17_v18  ;;  %vm29_vm1 = vcmp.gt.f32.partialorder %v21_v17, 0.0  ;;  %v37_v26 = vmul.f32 0.2, %v21_v17  ;;  %v376_v35 = vld [vmem:[%s486_s1 + $0x8] sm:$0xff]   ;;  %v378_v42 = vld [vmem:[%s486_s1] sm:$0xff]  }
   0x8   :  { %323 = vmatprep.subr.bf16.mxu0 %v367_v4  ;;  %349 = vmatprep.subr.bf16.mxu1 %v367_v4  ;;  %vm27_vm0 = vcmp.gt.f32.partialorder %v19_v15, 0.0  ;;  %v35_v25 = vmul.f32 0.2, %v19_v15  ;;  %vm31_vm2 = vcmp.gt.f32.partialorder %v23_v22, 0.0  ;;  %v39_v27 = vmul.f32 0.2, %v23_v22 }
   0x9   :  { %vm33_vm3 = vcmp.gt.f32.partialorder %v25_v24, 0.0  ;;  %v41_v28 = vmul.f32 0.2, %v25_v24  ;;  %v45_v30 = vsel %vm29_vm1, %v21_v17, %v37_v26  ;;  %v34_v34 = vmul.f32 0.2, %v18_v14 }
   0xa   :  { %v43_v29 = vsel %vm27_vm0, %v19_v15, %v35_v25  ;;  %v47_v32 = vsel %vm31_vm2, %v23_v22, %v39_v27  ;;  %vm26_vm4 = vcmp.gt.f32.partialorder %v18_v14, 0.0  ;;  %vm28_vm5 = vcmp.gt.f32.partialorder %v20_v16, 0.0 }
   0xb   :  { %324 = vmatpush3.bf16.msra.mxu0 %v368_v5  ;;  %357 = vmatpush3.bf16.msra.mxu1 %v368_v5  ;;  %v51_v31 = vpack.c.bf16 %v45_v30, %v43_v29  ;;  %v49_v33 = vsel %vm33_vm3, %v25_v24, %v41_v28  ;;  %v36_v38 = vmul.f32 0.2, %v20_v16  ;;  %vm30_vm6 = vcmp.gt.f32.partialorder %v22_v21, 0.0 }
   0xc   :  { %325 = vmatprep.subr.bf16.mxu0 %v369_v6  ;;  %350 = vmatprep.subr.bf16.mxu1 %v369_v6  ;;  %v53_v37 = vpack.c.bf16 %v49_v33, %v47_v32  ;;  %vm32_vm7 = vcmp.gt.f32.partialorder %v24_v23, 0.0  ;;  %v38_v39 = vmul.f32 0.2, %v22_v21  ;;  %v40_v40 = vmul.f32 0.2, %v24_v23 }
   0xd   :  { %214 = vmatprep.mubr.bf16.mxu0 %v51_v31  ;;  %v42_v41 = vsel %vm26_vm4, %v18_v14, %v34_v34  ;;  %v44_v43 = vsel %vm28_vm5, %v20_v16, %v36_v38 }
   0xe   :  { %222 = vmatprep.mubr.bf16.mxu1 %v53_v37  ;;  %v46_v44 = vsel %vm30_vm6, %v22_v21, %v38_v39  ;;  %v48_v45 = vsel %vm32_vm7, %v24_v23, %v40_v40  ;;  %v50_v46 = vpack.c.bf16 %v44_v43, %v42_v41 }
   0xf   :  { %326 = vmatpush3.bf16.msra.mxu0 %v370_v7  ;;  %358 = vmatpush3.bf16.msra.mxu1 %v370_v7  ;;  %v52_v47 = vpack.c.bf16 %v48_v45, %v46_v44 }
  0x10   :  { %327 = vmatprep.subr.bf16.mxu0 %v371_v8  ;;  %351 = vmatprep.subr.bf16.mxu1 %v371_v8 }
  0x13   :  { %328 = vmatpush3.bf16.msra.mxu0 %v372_v9  ;;  %359 = vmatpush3.bf16.msra.mxu1 %v372_v9 }
  0x14   :  { %329 = vmatprep.subr.bf16.mxu0 %v373_v10  ;;  %352 = vmatprep.subr.bf16.mxu1 %v373_v10 }
  0x17   :  { %330 = vmatpush3.bf16.msra.mxu0 %v374_v19  ;;  %360 = vmatpush3.bf16.msra.mxu1 %v374_v19 }
  0x18   :  { %331 = vmatprep.subr.bf16.mxu0 %v375_v20  ;;  %353 = vmatprep.subr.bf16.mxu1 %v375_v20 }
  0x1b   :  { %332 = vmatpush3.bf16.msra.mxu0 %v376_v35  ;;  %361 = vmatpush3.bf16.msra.mxu1 %v376_v35 }
  0x1c   :  { %333 = vmatprep.subr.bf16.mxu0 %v377_v36  ;;  %354 = vmatprep.subr.bf16.mxu1 %v377_v36 }
  0x1f   :  { %334 = vmatpush3.bf16.msra.mxu0 %v378_v42  ;;  %362 = vmatpush3.bf16.msra.mxu1 %v378_v42 }
  0x22   :  { %215 = vmatmul.mubr.bf16.vlgmr.msra.gmra.mxu0 %v50_v46  ;;  %223 = vmatmul.mubr.bf16.vlgmr.msra.gmra.mxu1 %v52_v47 }
  0xe2   :  { %v335_v48 = vpop.f32.mrf.mxu0  ;;  %v341_v49 = vpop.f32.mrf.mxu1 }
  0xe4   :  { %v336_v50 = vpop.f32.mrf.mxu0  ;;  %v342_v51 = vpop.f32.mrf.mxu1 }
  0xe5   :  { %v337_v52 = vadd.f32 %v336_v50, %v335_v48  ;;  %v343_v53 = vadd.f32 %v342_v51, %v341_v49 }
  0xe6   :  { %v338_v54 = vpop.f32.mrf.mxu0  ;;  %v344_v55 = vpop.f32.mrf.mxu1 }
  0xe7   :  { %v315_v56 = vpack.c.bf16 %v337_v52, %v337_v52  ;;  %v317_v57 = vpack.c.bf16 %v343_v53, %v343_v53  ;;  %v266_v60 = vmul.f32 %v337_v52, %v337_v52  ;;  %v253_v63 = vsel %vm252_vm9, %v337_v52, 0.0 }
  0xe8   :  { %v339_v58 = vpop.f32.mrf.mxu0  ;;  %v345_v59 = vpop.f32.mrf.mxu1  ;;  %v268_v0 = vmul.f32 %v343_v53, %v343_v53  ;;  %v256_v7 = vsel %vm252_vm9, %v343_v53, 0.0 }
  0xe9   :  { %248 = vst.msk [vmem:[%s488_s2] sm:$0xf] %vm247_vm8, %v315_v56  ;;  %250 = vst.msk [vmem:[%s488_s2 + $0x8] sm:$0xf] %vm247_vm8, %v317_v57  ;;  %v340_v61 = vadd.f32 %v339_v58, %v338_v54  ;;  %v346_v62 = vadd.f32 %v345_v59, %v344_v55  ;;  %v270_v6 = vsel %vm252_vm9, %v266_v60, 0.0 }
  0xea   :  { %v273_v12 = vsel %vm252_vm9, %v268_v0, 0.0 }
  0xeb   :  { %v316_v1 = vpack.c.bf16 %v340_v61, %v340_v61  ;;  %v254_v2 = vsel %vm252_vm9, %v340_v61, 0.0  ;;  %v267_v3 = vmul.f32 %v340_v61, %v340_v61  ;;  %v318_v4 = vpack.c.bf16 %v346_v62, %v346_v62 }
  0xec   :  { %v255_v5 = vadd.f32 %v254_v2, %v253_v63  ;;  %v269_v9 = vmul.f32 %v346_v62, %v346_v62  ;;  %v258_v13 = vsel %vm252_vm9, %v346_v62, 0.0 }
  0xed   :  { %249 = vst.msk [vmem:[%s488_s2 + $0x4] sm:$0xf] %vm247_vm8, %v316_v1  ;;  %v271_v8 = vsel %vm252_vm9, %v267_v3, 0.0  ;;  %251 = vst.msk [vmem:[%s488_s2 + $0xc] sm:$0xf] %vm247_vm8, %v318_v4 }
  0xee   :  { %v272_v10 = vadd.f32 %v271_v8, %v270_v6  ;;  %v257_v11 = vadd.f32 %v256_v7, %v255_v5  ;;  %v275_v16 = vsel %vm252_vm9, %v269_v9, 0.0 }
  0xf0   :  { %v259_v14 = vadd.f32 %v258_v13, %v257_v11  ;;  %v274_v15 = vadd.f32 %v273_v12, %v272_v10 }
  0xf2   :  { %v260_v17 = vrot.slane %v259_v14, 4  ;;  %v276_v18 = vadd.f32 %v275_v16, %v274_v15 }
  0xf4   :  { %v261_v19 = vadd.f32 %v260_v17, %v259_v14  ;;  %v277_v20 = vrot.slane %v276_v18, 4 }
  0xf6   :  { %v262_v21 = vrot.slane %v261_v19, 2  ;;  %v278_v22 = vadd.f32 %v277_v20, %v276_v18 }
  0xf8   :  { %v263_v23 = vadd.f32 %v262_v21, %v261_v19  ;;  %v279_v24 = vrot.slane %v278_v22, 2 }
  0xfa   :  { %v264_v25 = vrot.slane %v263_v23, 1  ;;  %v280_v26 = vadd.f32 %v279_v24, %v278_v22 }
  0xfc   :  { %v281_v27 = vrot.slane %v280_v26, 1  ;;  %v265_v28 = vadd.f32 %v264_v25, %v263_v23 }
  0xfe   :  { %v282_v29 = vadd.f32 %v281_v27, %v280_v26 }
 0x100   :  { %v284_v30 = vsel %vm283_vm10, %v265_v28, %v282_v29 }
 0x101   :  { %286 = vst.msk [vmem:[%s489_s3] sm:$0x3] %vm285_vm11, %v284_v30 }

// kernel: _lambda_.8
= control target key start
LH: loop header
LB: loop body
LE: loop exit
PB: predicated region body
PF: predicated region fallthrough
CT: control target
= control target key end

     0   :  { %s808_s1 = inlined_call_operand.vmem [shape: bf16[512,32], index: 1, kind: input, shape index: {}]   ;;  %s809_s0 = inlined_call_operand.vmem [shape: bf16[32,512], index: 0, kind: input, shape index: {}]   ;;  %s810_s2 = inlined_call_operand.vmem [shape: bf16[32,32], index: 2, kind: output, shape index: {0}]   ;;  %s811_s3 = inlined_call_operand.vmem [shape: f32[1,2,32], index: 3, kind: output, shape index: {1}]  }
   0x1   :  { %v608_v0 = vld [vmem:[%s808_s1 + $0x78] sm:$0xff]   ;;  %v612_v4 = vld [vmem:[%s808_s1 + $0x70] sm:$0xff]   ;;  %v616_v8 = vld [vmem:[%s808_s1 + $0x68] sm:$0xff]  }
   0x2   :  { %v609_v1 = vld [vmem:[%s808_s1 + $0xf8] sm:$0xff]   ;;  %552 = vmatprep.subr.bf16.mxu0 %v608_v0  ;;  %v613_v5 = vld [vmem:[%s808_s1 + $0xf0] sm:$0xff]   ;;  %v617_v9 = vld [vmem:[%s808_s1 + $0xe8] sm:$0xff]  }
   0x3   :  { %v610_v2 = vld [vmem:[%s808_s1 + $0x38] sm:$0xff]   ;;  %580 = vmatprep.subr.bf16.mxu1 %v609_v1  ;;  %v614_v6 = vld [vmem:[%s808_s1 + $0x30] sm:$0xff]   ;;  %v618_v10 = vld [vmem:[%s808_s1 + $0x28] sm:$0xff]  }
   0x4   :  { %v611_v3 = vld [vmem:[%s808_s1 + $0xb8] sm:$0xff]   ;;  %553 = vmatpush3.bf16.msra.mxu0 %v610_v2  ;;  %v615_v7 = vld [vmem:[%s808_s1 + $0xb0] sm:$0xff]   ;;  %v619_v11 = vld [vmem:[%s808_s1 + $0xa8] sm:$0xff]  }
   0x5   :  { %581 = vmatpush3.bf16.msra.mxu1 %v611_v3  ;;  %554 = vmatprep.subr.bf16.mxu0 %v612_v4  ;;  %v620_v12 = vld [vmem:[%s808_s1 + $0x60] sm:$0xff]   ;;  %v624_v16 = vld [vmem:[%s808_s1 + $0x58] sm:$0xff]   ;;  %v628_v20 = vld [vmem:[%s808_s1 + $0x50] sm:$0xff]  }
   0x6   :  { %582 = vmatprep.subr.bf16.mxu1 %v613_v5  ;;  %v621_v13 = vld [vmem:[%s808_s1 + $0xe0] sm:$0xff]   ;;  %v625_v17 = vld [vmem:[%s808_s1 + $0xd8] sm:$0xff]   ;;  %v629_v21 = vld [vmem:[%s808_s1 + $0xd0] sm:$0xff]  }
   0x7   :  { %v622_v14 = vld [vmem:[%s808_s1 + $0x20] sm:$0xff]   ;;  %v626_v18 = vld [vmem:[%s808_s1 + $0x18] sm:$0xff]   ;;  %v630_v22 = vld [vmem:[%s808_s1 + $0x10] sm:$0xff]  }
   0x8   :  { %555 = vmatpush3.bf16.msra.mxu0 %v614_v6  ;;  %v623_v15 = vld [vmem:[%s808_s1 + $0xa0] sm:$0xff]   ;;  %v627_v19 = vld [vmem:[%s808_s1 + $0x98] sm:$0xff]   ;;  %v631_v23 = vld [vmem:[%s808_s1 + $0x90] sm:$0xff]  }
   0x9   :  { %583 = vmatpush3.bf16.msra.mxu1 %v615_v7  ;;  %556 = vmatprep.subr.bf16.mxu0 %v616_v8  ;;  %v632_v24 = vld [vmem:[%s808_s1 + $0x48] sm:$0xff]   ;;  %v636_v28 = vld [vmem:[%s808_s1 + $0x40] sm:$0xff]   ;;  %v16_v33 = vld [vmem:[%s809_s0 + $0x10] sm:$0xff] }
   0xa   :  { %584 = vmatprep.subr.bf16.mxu1 %v617_v9  ;;  %v633_v25 = vld [vmem:[%s808_s1 + $0xc8] sm:$0xff]   ;;  %v637_v29 = vld [vmem:[%s808_s1 + $0xc0] sm:$0xff]   ;;  %v26_v37 = vunpack.c.l.bf16 %v16_v33  ;;  %v27_v38 = vunpack.c.h.bf16 %v16_v33  ;;  %v17_v39 = vld [vmem:[%s809_s0 + $0x18] sm:$0xff] }
   0xb   :  { %v634_v26 = vld [vmem:[%s808_s1 + $0x8] sm:$0xff]   ;;  %v638_v30 = vld [vmem:[%s808_s1] sm:$0xff]   ;;  %v28_v42 = vunpack.c.l.bf16 %v17_v39  ;;  %v29_v43 = vunpack.c.h.bf16 %v17_v39  ;;  %v20_v55 = vld [vmem:[%s809_s0 + $0x30] sm:$0xff] }
   0xc   :  { %557 = vmatpush3.bf16.msra.mxu0 %v618_v10  ;;  %v635_v27 = vld [vmem:[%s808_s1 + $0x88] sm:$0xff]   ;;  %v639_v31 = vld [vmem:[%s808_s1 + $0x80] sm:$0xff]   ;;  %vm43_vm1 = vcmp.gt.f32.partialorder %v27_v38, 0.0  ;;  %v59_v45 = vmul.f32 0.2, %v27_v38  ;;  %vm42_vm5 = vcmp.gt.f32.partialorder %v26_v37, 0.0  ;;  %v35_v1 = vunpack.c.h.bf16 %v20_v55 }
   0xd   :  { %585 = vmatpush3.bf16.msra.mxu1 %v619_v11  ;;  %558 = vmatprep.subr.bf16.mxu0 %v620_v12  ;;  %v14_v32 = vld [vmem:[%s809_s0] sm:$0xff]  ;;  %v15_v34 = vld [vmem:[%s809_s0 + $0x8] sm:$0xff]  ;;  %vm45_vm3 = vcmp.gt.f32.partialorder %v29_v43, 0.0  ;;  %v61_v47 = vmul.f32 0.2, %v29_v43  ;;  %v21_v57 = vld [vmem:[%s809_s0 + $0x38] sm:$0xff] }
   0xe   :  { %586 = vmatprep.subr.bf16.mxu1 %v621_v13  ;;  %v22_v35 = vunpack.c.l.bf16 %v14_v32  ;;  %v23_v36 = vunpack.c.h.bf16 %v14_v32  ;;  %v24_v40 = vunpack.c.l.bf16 %v15_v34  ;;  %v25_v41 = vunpack.c.h.bf16 %v15_v34  ;;  %v18_v50 = vld [vmem:[%s809_s0 + $0x20] sm:$0xff]  ;;  %v19_v56 = vld [vmem:[%s809_s0 + $0x28] sm:$0xff] }
   0xf   :  { %v75_v49 = vsel %vm43_vm1, %v27_v38, %v59_v45  ;;  %v77_v53 = vsel %vm45_vm3, %v29_v43, %v61_v47  ;;  %v58_v59 = vmul.f32 0.2, %v26_v37  ;;  %vm44_vm7 = vcmp.gt.f32.partialorder %v28_v42, 0.0 }
  0x10   :  { %559 = vmatpush3.bf16.msra.mxu0 %v622_v14  ;;  %vm39_vm0 = vcmp.gt.f32.partialorder %v23_v36, 0.0  ;;  %v55_v44 = vmul.f32 0.2, %v23_v36  ;;  %vm41_vm2 = vcmp.gt.f32.partialorder %v25_v41, 0.0  ;;  %v57_v46 = vmul.f32 0.2, %v25_v41 }
  0x11   :  { %587 = vmatpush3.bf16.msra.mxu1 %v623_v15  ;;  %560 = vmatprep.subr.bf16.mxu0 %v624_v16  ;;  %vm38_vm4 = vcmp.gt.f32.partialorder %v22_v35, 0.0  ;;  %v54_v54 = vmul.f32 0.2, %v22_v35  ;;  %vm40_vm6 = vcmp.gt.f32.partialorder %v24_v40, 0.0  ;;  %v56_v61 = vmul.f32 0.2, %v24_v40 }
  0x12   :  { %588 = vmatprep.subr.bf16.mxu1 %v625_v17  ;;  %v71_v48 = vsel %vm39_vm0, %v23_v36, %v55_v44  ;;  %v73_v52 = vsel %vm41_vm2, %v25_v41, %v57_v46  ;;  %v60_v62 = vmul.f32 0.2, %v28_v42  ;;  %v31_v63 = vunpack.c.h.bf16 %v18_v50 }
  0x13   :  { %v87_v51 = vpack.c.bf16 %v75_v49, %v71_v48  ;;  %v89_v58 = vpack.c.bf16 %v77_v53, %v73_v52  ;;  %v70_v60 = vsel %vm38_vm4, %v22_v35, %v54_v54  ;;  %v74_v0 = vsel %vm42_vm5, %v26_v37, %v58_v59 }
  0x14   :  { %561 = vmatpush3.bf16.msra.mxu0 %v626_v18  ;;  %v33_v2 = vunpack.c.h.bf16 %v19_v56  ;;  %v37_v3 = vunpack.c.h.bf16 %v21_v57  ;;  %v86_v4 = vpack.c.bf16 %v74_v0, %v70_v60  ;;  %v72_v5 = vsel %vm40_vm6, %v24_v40, %v56_v61 }
  0x15   :  { %589 = vmatpush3.bf16.msra.mxu1 %v627_v19  ;;  %562 = vmatprep.subr.bf16.mxu0 %v628_v20  ;;  %v76_v6 = vsel %vm44_vm7, %v28_v42, %v60_v62  ;;  %vm47_vm8 = vcmp.gt.f32.partialorder %v31_v63, 0.0  ;;  %vm51_vm9 = vcmp.gt.f32.partialorder %v35_v1, 0.0  ;;  %v63_v8 = vmul.f32 0.2, %v31_v63 }
  0x16   :  { %590 = vmatprep.subr.bf16.mxu1 %v629_v21  ;;  %382 = vmatprep.mubr.bf16.mxu0 %v87_v51  ;;  %v88_v7 = vpack.c.bf16 %v76_v6, %v72_v5  ;;  %v67_v9 = vmul.f32 0.2, %v35_v1  ;;  %vm49_vm10 = vcmp.gt.f32.partialorder %v33_v2, 0.0  ;;  %vm53_vm11 = vcmp.gt.f32.partialorder %v37_v3, 0.0 }
  0x17   :  { %431 = vmatprep.mubr.bf16.mxu1 %v89_v58  ;;  %v65_v10 = vmul.f32 0.2, %v33_v2  ;;  %v69_v11 = vmul.f32 0.2, %v37_v3  ;;  %v79_v12 = vsel %vm47_vm8, %v31_v63, %v63_v8  ;;  %v30_v14 = vunpack.c.l.bf16 %v18_v50 }
  0x18   :  { %563 = vmatpush3.bf16.msra.mxu0 %v630_v22  ;;  %v83_v13 = vsel %vm51_vm9, %v35_v1, %v67_v9  ;;  %v34_v15 = vunpack.c.l.bf16 %v20_v55  ;;  %v32_v19 = vunpack.c.l.bf16 %v19_v56  ;;  %vm464_vm0 = vcmask 257024  }
  0x19   :  { %591 = vmatpush3.bf16.msra.mxu1 %v631_v23  ;;  %564 = vmatprep.subr.bf16.mxu0 %v632_v24  ;;  %v91_v16 = vpack.c.bf16 %v83_v13, %v79_v12  ;;  %v81_v17 = vsel %vm49_vm10, %v33_v2, %v65_v10  ;;  %v85_v18 = vsel %vm53_vm11, %v37_v3, %v69_v11  ;;  %vm46_vm12 = vcmp.gt.f32.partialorder %v30_v14, 0.0 }
  0x1a   :  { %592 = vmatprep.subr.bf16.mxu1 %v633_v25  ;;  %v93_v20 = vpack.c.bf16 %v85_v18, %v81_v17  ;;  %vm50_vm13 = vcmp.gt.f32.partialorder %v34_v15, 0.0  ;;  %v62_v21 = vmul.f32 0.2, %v30_v14  ;;  %v66_v22 = vmul.f32 0.2, %v34_v15 }
  0x1b   :  { %v36_v23 = vunpack.c.l.bf16 %v21_v57  ;;  %vm48_vm14 = vcmp.gt.f32.partialorder %v32_v19, 0.0  ;;  %v64_v24 = vmul.f32 0.2, %v32_v19  ;;  %vm469_vm1 = vcmask 261120  }
  0x1c   :  { %565 = vmatpush3.bf16.msra.mxu0 %v634_v26  ;;  %v78_v25 = vsel %vm46_vm12, %v30_v14, %v62_v21  ;;  %v82_v26 = vsel %vm50_vm13, %v34_v15, %v66_v22  ;;  %vm500_vm2 = vcmask 1040384   ;;  %vm502_vm3 = vcmask 254976  }
  0x1d   :  { %593 = vmatpush3.bf16.msra.mxu1 %v635_v27  ;;  %566 = vmatprep.subr.bf16.mxu0 %v636_v28  ;;  %vm52_vm15 = vcmp.gt.f32.partialorder %v36_v23, 0.0  ;;  %v68_v27 = vmul.f32 0.2, %v36_v23  ;;  %v80_v28 = vsel %vm48_vm14, %v32_v19, %v64_v24 }
  0x1e   :  { %594 = vmatprep.subr.bf16.mxu1 %v637_v29  ;;  %v90_v29 = vpack.c.bf16 %v82_v26, %v78_v25 }
  0x20   :  { %567 = vmatpush3.bf16.msra.mxu0 %v638_v30  ;;  %v84_v30 = vsel %vm52_vm15, %v36_v23, %v68_v27 }
  0x21   :  { %595 = vmatpush3.bf16.msra.mxu1 %v639_v31  ;;  %v92_v31 = vpack.c.bf16 %v84_v30, %v80_v28 }
  0x23   :  { %383 = vmatmul.mubr.bf16.vlgmr.msra.gmra.mxu0 %v86_v4 }
  0x24   :  { %432 = vmatmul.mubr.bf16.vlgmr.msra.gmra.mxu1 %v88_v7  ;;  %390 = vmatprep.mubr.bf16.mxu0 %v91_v16 }
  0x25   :  { %439 = vmatprep.mubr.bf16.mxu1 %v93_v20 }
  0x2b   :  { %391 = vmatmul.mubr.bf16.gmra.mxu0 %v90_v29 }
  0x2c   :  { %440 = vmatmul.mubr.bf16.gmra.mxu1 %v92_v31 }
  0xe3   :  { %v568_v32 = vpop.f32.mrf.mxu0 }
  0xe4   :  { %v596_v33 = vpop.f32.mrf.mxu1 }
  0xe5   :  { %v569_v34 = vpop.f32.mrf.mxu0 }
  0xe6   :  { %v570_v35 = vadd.f32 %v569_v34, %v568_v32  ;;  %v597_v36 = vpop.f32.mrf.mxu1 }
  0xe7   :  { %v598_v37 = vadd.f32 %v597_v36, %v596_v33  ;;  %v571_v38 = vpop.f32.mrf.mxu0 }
  0xe8   :  { %v599_v39 = vpop.f32.mrf.mxu1 }
  0xe9   :  { %v434_v40 = vadd.f32 %v598_v37, %v570_v35  ;;  %v572_v41 = vpop.f32.mrf.mxu0 }
  0xea   :  { %v573_v42 = vadd.f32 %v572_v41, %v571_v38  ;;  %v600_v43 = vpop.f32.mrf.mxu1 }
  0xeb   :  { %v548_v44 = vpack.c.bf16 %v434_v40, %v434_v40  ;;  %v601_v45 = vadd.f32 %v600_v43, %v599_v39  ;;  %v574_v46 = vpop.f32.mrf.mxu0  ;;  %v483_v58 = vmul.f32 %v434_v40, %v434_v40  ;;  %v470_v62 = vsel %vm469_vm1, %v434_v40, 0.0 }
  0xec   :  { %v602_v48 = vpop.f32.mrf.mxu1 }
  0xed   :  { %465 = vst.msk [vmem:[%s810_s2] sm:$0xf] %vm464_vm0, %v548_v44  ;;  %v437_v47 = vadd.f32 %v601_v45, %v573_v42  ;;  %v575_v49 = vpop.f32.mrf.mxu0  ;;  %v487_v6 = vsel %vm469_vm1, %v483_v58, 0.0 }
  0xee   :  { %v576_v51 = vadd.f32 %v575_v49, %v574_v46  ;;  %v603_v53 = vpop.f32.mrf.mxu1 }
  0xef   :  { %v549_v50 = vpack.c.bf16 %v437_v47, %v437_v47  ;;  %v484_v52 = vmul.f32 %v437_v47, %v437_v47  ;;  %v577_v54 = vpop.f32.mrf.mxu0  ;;  %v604_v55 = vadd.f32 %v603_v53, %v602_v48  ;;  %v471_v59 = vsel %vm469_vm1, %v437_v47, 0.0 }
  0xf0   :  { %v605_v56 = vpop.f32.mrf.mxu1  ;;  %v472_v5 = vadd.f32 %v471_v59, %v470_v62 }
  0xf1   :  { %466 = vst.msk [vmem:[%s810_s2 + $0x4] sm:$0xf] %vm464_vm0, %v549_v50  ;;  %v578_v57 = vpop.f32.mrf.mxu0  ;;  %v442_v60 = vadd.f32 %v604_v55, %v576_v51  ;;  %v488_v63 = vsel %vm469_vm1, %v484_v52, 0.0 }
  0xf2   :  { %v579_v61 = vadd.f32 %v578_v57, %v577_v54  ;;  %v606_v0 = vpop.f32.mrf.mxu1  ;;  %v489_v9 = vadd.f32 %v488_v63, %v487_v6 }
  0xf3   :  { %v550_v1 = vpack.c.bf16 %v442_v60, %v442_v60  ;;  %v473_v2 = vsel %vm469_vm1, %v442_v60, 0.0  ;;  %v485_v3 = vmul.f32 %v442_v60, %v442_v60  ;;  %v607_v4 = vadd.f32 %v606_v0, %v605_v56 }
  0xf4   :  { %v474_v10 = vadd.f32 %v473_v2, %v472_v5 }
  0xf5   :  { %467 = vst.msk [vmem:[%s810_s2 + $0x8] sm:$0xf] %vm464_vm0, %v550_v1  ;;  %v490_v7 = vsel %vm469_vm1, %v485_v3, 0.0  ;;  %v445_v8 = vadd.f32 %v607_v4, %v579_v61 }
  0xf6   :  { %v491_v14 = vadd.f32 %v490_v7, %v489_v9 }
  0xf7   :  { %v551_v11 = vpack.c.bf16 %v445_v8, %v445_v8  ;;  %v475_v12 = vsel %vm469_vm1, %v445_v8, 0.0  ;;  %v486_v13 = vmul.f32 %v445_v8, %v445_v8 }
  0xf8   :  { %v476_v15 = vadd.f32 %v475_v12, %v474_v10 }
  0xf9   :  { %468 = vst.msk [vmem:[%s810_s2 + $0xc] sm:$0xf] %vm464_vm0, %v551_v11  ;;  %v492_v16 = vsel %vm469_vm1, %v486_v13, 0.0 }
  0xfa   :  { %v477_v17 = vrot.slane %v476_v15, 4  ;;  %v493_v18 = vadd.f32 %v492_v16, %v491_v14 }
  0xfc   :  { %v478_v19 = vadd.f32 %v477_v17, %v476_v15  ;;  %v494_v20 = vrot.slane %v493_v18, 4 }
  0xfe   :  { %v479_v21 = vrot.slane %v478_v19, 2  ;;  %v495_v22 = vadd.f32 %v494_v20, %v493_v18 }
 0x100   :  { %v480_v23 = vadd.f32 %v479_v21, %v478_v19  ;;  %v496_v24 = vrot.slane %v495_v22, 2 }
 0x102   :  { %v481_v25 = vrot.slane %v480_v23, 1  ;;  %v497_v26 = vadd.f32 %v496_v24, %v495_v22 }
 0x104   :  { %v498_v27 = vrot.slane %v497_v26, 1  ;;  %v482_v28 = vadd.f32 %v481_v25, %v480_v23 }
 0x106   :  { %v499_v29 = vadd.f32 %v498_v27, %v497_v26 }
 0x108   :  { %v501_v30 = vsel %vm500_vm2, %v482_v28, %v499_v29 }
 0x109   :  { %503 = vst.msk [vmem:[%s811_s3] sm:$0x3] %vm502_vm3, %v501_v30 }

// kernel: _lambda_.9
= control target key start
LH: loop header
LB: loop body
LE: loop exit
PB: predicated region body
PF: predicated region fallthrough
CT: control target
= control target key end

     0   :  { %v54_v0 = vlaneseq  ;;  %vm113_vm8 = vcmask 7168   ;;  %s175_s0 = inlined_call_operand.vmem [shape: bf16[16,512], index: 0, kind: input, shape index: {}]   ;;  %s176_s2 = inlined_call_operand.<no memory space> [shape: f32[1,1], index: 2, kind: input, shape index: {}]   ;;  %s177_s1 = inlined_call_operand.vmem [shape: f32[1,512], index: 1, kind: input, shape index: {}]   ;;  %s178_s3 = inlined_call_operand.vmem [shape: f32[16,1], index: 3, kind: output, shape index: {}]  }
   0x1   :  { %v16_v1 = vld [vmem:[%s175_s0] sm:$0xff]  ;;  %v17_v2 = vld [vmem:[%s175_s0 + $0x8] sm:$0xff]  ;;  %v8_v3 = vstv %s176_s2  ;;  %v18_v8 = vld [vmem:[%s175_s0 + $0x10] sm:$0xff] }
   0x2   :  { %v20_v4 = vunpack.c.l.bf16 %v16_v1  ;;  %v21_v5 = vunpack.c.h.bf16 %v16_v1  ;;  %v22_v6 = vunpack.c.l.bf16 %v17_v2  ;;  %v23_v7 = vunpack.c.h.bf16 %v17_v2  ;;  %v19_v9 = vld [vmem:[%s175_s0 + $0x18] sm:$0xff]  ;;  %9 = vst [vmem:[#allocation2] sm:$0x1] %v8_v3  ;;  %v52_v14 = vld [vmem:[%s177_s1] sm:$0xf] }
   0x3   :  { %v55_v10 = vshrl.u32 %v54_v0, 7  ;;  %v24_v11 = vunpack.c.l.bf16 %v18_v8  ;;  %v25_v12 = vunpack.c.h.bf16 %v18_v8  ;;  %v26_v13 = vunpack.c.l.bf16 %v19_v9 }
   0x4   :  { %vm28_vm0 = vcmp.gt.f32.partialorder %v20_v4, 0.0  ;;  %vm29_vm1 = vcmp.gt.f32.partialorder %v21_v5, 0.0  ;;  %vm30_vm2 = vcmp.gt.f32.partialorder %v22_v6, 0.0  ;;  %vm31_vm3 = vcmp.gt.f32.partialorder %v23_v7, 0.0 }
   0x5   :  { %v36_v15 = vmul.f32 0.2, %v20_v4  ;;  %v37_v16 = vmul.f32 0.2, %v21_v5  ;;  %v38_v17 = vmul.f32 0.2, %v22_v6  ;;  %v27_v18 = vunpack.c.h.bf16 %v19_v9 }
   0x6   :  { %v39_v19 = vmul.f32 0.2, %v23_v7  ;;  %v56_v20 = vsub.s32 0, %v55_v10  ;;  %v60_v21 = vsub.s32 1, %v55_v10  ;;  %v64_v22 = vsub.s32 2, %v55_v10 }
   0x7   :  { %v44_v23 = vsel %vm28_vm0, %v20_v4, %v36_v15  ;;  %v45_v24 = vsel %vm29_vm1, %v21_v5, %v37_v16  ;;  %v46_v25 = vsel %vm30_vm2, %v22_v6, %v38_v17  ;;  %v68_v26 = vsub.s32 3, %v55_v10 }
   0x8   :  { %v47_v27 = vsel %vm31_vm3, %v23_v7, %v39_v19  ;;  %v57_v28 = vrot.slane %v52_v14, %v56_v20  ;;  %v61_v29 = vrot.slane %v52_v14, %v60_v21  ;;  %v65_v30 = vrot.slane %v52_v14, %v64_v22 }
   0x9   :  { %v69_v31 = vrot.slane %v52_v14, %v68_v26  ;;  %vm32_vm4 = vcmp.gt.f32.partialorder %v24_v11, 0.0  ;;  %vm33_vm5 = vcmp.gt.f32.partialorder %v25_v12, 0.0  ;;  %vm34_vm6 = vcmp.gt.f32.partialorder %v26_v13, 0.0  ;;  %v120_v54 = vld [vmem:[#allocation2] ss:$0 sm:$0xff] }
   0xa   :  { %v74_v32 = vmul.f32 %v57_v28, %v44_v23  ;;  %v75_v33 = vmul.f32 %v61_v29, %v45_v24  ;;  %v76_v34 = vmul.f32 %v65_v30, %v46_v25  ;;  %vm35_vm7 = vcmp.gt.f32.partialorder %v27_v18, 0.0 }
   0xb   :  { %v40_v35 = vmul.f32 0.2, %v24_v11  ;;  %v41_v36 = vmul.f32 0.2, %v25_v12  ;;  %v42_v37 = vmul.f32 0.2, %v26_v13  ;;  %v77_v38 = vmul.f32 %v69_v31, %v47_v27 }
   0xc   :  { %v82_v39 = vadd.f32 %v75_v33, %v74_v32  ;;  %v43_v40 = vmul.f32 0.2, %v27_v18 }
   0xd   :  { %v48_v41 = vsel %vm32_vm4, %v24_v11, %v40_v35  ;;  %v49_v42 = vsel %vm33_vm5, %v25_v12, %v41_v36  ;;  %v50_v43 = vsel %vm34_vm6, %v26_v13, %v42_v37 }
   0xe   :  { %v83_v44 = vadd.f32 %v82_v39, %v76_v34  ;;  %v51_v45 = vsel %vm35_vm7, %v27_v18, %v43_v40  ;;  %v78_v46 = vmul.f32 %v57_v28, %v48_v41  ;;  %v79_v47 = vmul.f32 %v61_v29, %v49_v42 }
   0xf   :  { %v80_v48 = vmul.f32 %v65_v30, %v50_v43  ;;  %v81_v50 = vmul.f32 %v69_v31, %v51_v45 }
  0x10   :  { %v84_v49 = vadd.f32 %v83_v44, %v77_v38  ;;  %v87_v51 = vadd.f32 %v79_v47, %v78_v46 }
  0x12   :  { %85 = vadd.xlane.f32.xlu0 %v84_v49  ;;  %v88_v52 = vadd.f32 %v87_v51, %v80_v48 }
  0x14   :  { %v89_v53 = vadd.f32 %v88_v52, %v81_v50 }
  0x16   :  { %90 = vadd.xlane.f32.xlu0 %v89_v53 }
  0x9b   :  { %v86_v55 = vpop.xlane.xlu0 %85 }
  0x9c   :  { %v99_v56 = vadd.f32 %v120_v54, %v86_v55 }
  0x9e   :  { %v121_v57 = vmul.f32 -1.442695, %v99_v56 }
  0x9f   :  { %v91_v58 = vpop.xlane.xlu0 %90 }
  0xa0   :  { %123 = vpow2.f32 %v121_v57  ;;  %v100_v59 = vadd.f32 %v120_v54, %v91_v58 }
  0xa2   :  { %v122_v60 = vmul.f32 -1.442695, %v100_v59 }
  0xa4   :  { %125 = vpow2.f32 %v122_v60 }
  0xad   :  { %v124_v61 = vpop.eup %123 }
  0xae   :  { %v107_v62 = vadd.f32 1.0, %v124_v61 }
  0xb0   :  { %127 = vrcp.f32 %v107_v62 }
  0xb1   :  { %v126_v63 = vpop.eup %125 }
  0xb2   :  { %v108_v0 = vadd.f32 1.0, %v126_v63 }
  0xb4   :  { %129 = vrcp.f32 %v108_v0 }
  0xbd   :  { %v128_v1 = vpop.eup %127 }
  0xbe   :  { %114 = vst.msk [vmem:[%s178_s3] sm:$0xff] %vm113_vm8, %v128_v1 }
  0xc1   :  { %v130_v2 = vpop.eup %129 }
  0xc2   :  { %115 = vst.msk [vmem:[%s178_s3 + $0x8] sm:$0xff] %vm113_vm8, %v130_v2 }

</bundles_post_ra>
